<compile_context>
chip_gen: v7x
topology: tpu7x:2x2x1
jax: 0.10.0
libtpu: 0.0.40
codegen_flags: <defaults>
</compile_context>

<pallas_src>
import numpy as np
import jax
import jax.numpy as jnp
from jax.experimental import pallas as pl
from jax.experimental.pallas import tpu as pltpu

# ---- synthetic "bert-base" config at small scale ----
VOCAB    = 128
B, S     = 2, 8          # batch, sequence length
H        = 32            # hidden size
N_HEADS  = 4
D_HEAD   = H // N_HEADS
INTER    = 64            # FFN intermediate size
N_LAYERS = 2
MAX_POS  = 16
EPS      = 1e-12         # BERT LayerNorm eps

assert S <= MAX_POS, "sequence length exceeds position-embedding table"


# ---------------- fused encoder kernel ----------------

def _layernorm(y, g, b):
    mu = jnp.mean(y, axis=-1, keepdims=True)
    var = jnp.mean((y - mu) ** 2, axis=-1, keepdims=True)
    return (y - mu) * jax.lax.rsqrt(var + EPS) * g + b


def _gelu(y):
    # tanh approximation of gelu; HF BERT uses the erf form — numerically very close.
    # TODO(synk): erf-based gelu for bit-compat with the PyTorch reference.
    c = jnp.float32(0.7978845608028654)  # sqrt(2/pi)
    return 0.5 * y * (1.0 + jnp.tanh(c * (y + 0.044715 * y * y * y)))


def bert_encoder_kernel(emb_ref, amask_ref, emb_g_ref, emb_b_ref,
                        wqkv_ref, bqkv_ref, wo_ref, bo_ref,
                        ln1_g_ref, ln1_b_ref, w1_ref, b1_ref,
                        w2_ref, b2_ref, ln2_g_ref, ln2_b_ref,
                        out_ref):
    """Processes one batch element (grid axis 0 = batch).

    emb_ref:   (1, S, H)  summed word+pos+type embeddings
    amask_ref: (1, 1, S)  additive attention mask (0 / -1e9)
    weight slabs are stacked over layers on axis 0 and fully VMEM-resident.
    The hidden state is carried in registers across the (unrolled) layer loop.
    """
    amask = amask_ref[0]                                   # (1, S), bcast over q rows

    # embeddings LayerNorm
    h = _layernorm(emb_ref[0], emb_g_ref[...], emb_b_ref[...])       # (S, H) f32

    for l in range(N_LAYERS):                              # static unroll: static slab slices
        # ---- self-attention: fused QKV matmul (bf16 weights, f32 accum) ----
        qkv = jnp.dot(h.astype(jnp.bfloat16), wqkv_ref[l],
                      preferred_element_type=jnp.float32) + bqkv_ref[l]   # (S, 3H)
        wo = wo_ref[l]                                     # (H, H) f32

        attn = jnp.zeros((S, H), jnp.float32)
        for hd in range(N_HEADS):                          # static per-head loop
            lo = hd * D_HEAD
            q = qkv[:, lo:lo + D_HEAD]                     # (S, dH) (scale folded in wq)
            k = qkv[:, H + lo:H + lo + D_HEAD]             # (S, dH)
            v = qkv[:, 2 * H + lo:2 * H + lo + D_HEAD]     # (S, dH)

            s = jax.lax.dot_general(q, k, (((1,), (1,)), ((), ())),
                                    preferred_element_type=jnp.float32)   # (S, S)
            s = s + amask
            s = s - jnp.max(s, axis=-1, keepdims=True)     # stable softmax
            p = jnp.exp(s)
            p = p * pl.reciprocal(jnp.sum(p, axis=-1, keepdims=True), approx=True)
            ctx = jnp.dot(p, v, preferred_element_type=jnp.float32)       # (S, dH)
            # per-head partial output projection (== concat-heads @ wo)
            attn = attn + jnp.dot(ctx, wo[lo:lo + D_HEAD, :],
                                  preferred_element_type=jnp.float32)
        attn = attn + bo_ref[l]

        h = _layernorm(attn + h, ln1_g_ref[l], ln1_b_ref[l])

        # ---- FFN (bf16 weights, f32 accum) ----
        ff = _gelu(jnp.dot(h.astype(jnp.bfloat16), w1_ref[l],
                           preferred_element_type=jnp.float32) + b1_ref[l])
        ff = jnp.dot(ff.astype(jnp.bfloat16), w2_ref[l],
                     preferred_element_type=jnp.float32) + b2_ref[l]

        h = _layernorm(ff + h, ln2_g_ref[l], ln2_b_ref[l])

    out_ref[0] = h


# ---------------- parameter init / packing ----------------

def init_params(key):
    ks = jax.random.split(key, 9)

    def nrm(k, shape):
        return jax.random.normal(k, shape, jnp.float32) * 0.02

    L = N_LAYERS
    return {
        'word_emb': nrm(ks[0], (VOCAB, H)),
        'pos_emb':  nrm(ks[1], (MAX_POS, H)),
        'type_emb': nrm(ks[2], (2, H)),
        'emb_ln_g': jnp.ones((1, H), jnp.float32),
        'emb_ln_b': jnp.zeros((1, H), jnp.float32),
        'wq': nrm(ks[3], (L, H, H)), 'bq': jnp.zeros((L, 1, H), jnp.float32),
        'wk': nrm(ks[4], (L, H, H)), 'bk': jnp.zeros((L, 1, H), jnp.float32),
        'wv': nrm(ks[5], (L, H, H)), 'bv': jnp.zeros((L, 1, H), jnp.float32),
        'wo': nrm(ks[6], (L, H, H)), 'bo': jnp.zeros((L, 1, H), jnp.float32),
        'ln1_g': jnp.ones((L, 1, H), jnp.float32),
        'ln1_b': jnp.zeros((L, 1, H), jnp.float32),
        'w1': nrm(ks[7], (L, H, INTER)), 'b1': jnp.zeros((L, 1, INTER), jnp.float32),
        'w2': nrm(ks[8], (L, INTER, H)), 'b2': jnp.zeros((L, 1, H), jnp.float32),
        'ln2_g': jnp.ones((L, 1, H), jnp.float32),
        'ln2_b': jnp.zeros((L, 1, H), jnp.float32),
    }


def pack_params(raw):
    """Stack QKV, fold the 1/sqrt(dH) scale into the Q projection, and cast the
    large matmul weights to bf16 for the full-rate MXU path."""
    scale = jnp.float32(1.0 / (D_HEAD ** 0.5))
    wqkv = jnp.concatenate([raw['wq'] * scale, raw['wk'], raw['wv']], axis=-1)  # (L,H,3H)
    bqkv = jnp.concatenate([raw['bq'] * scale, raw['bk'], raw['bv']], axis=-1)  # (L,1,3H)
    return {
        'word_emb': raw['word_emb'], 'pos_emb': raw['pos_emb'], 'type_emb': raw['type_emb'],
        'emb_ln_g': raw['emb_ln_g'], 'emb_ln_b': raw['emb_ln_b'],
        'wqkv': wqkv.astype(jnp.bfloat16), 'bqkv': bqkv,
        'wo': raw['wo'], 'bo': raw['bo'],                 # kept f32 (sliced per head)
        'ln1_g': raw['ln1_g'], 'ln1_b': raw['ln1_b'],
        'w1': raw['w1'].astype(jnp.bfloat16), 'b1': raw['b1'],
        'w2': raw['w2'].astype(jnp.bfloat16), 'b2': raw['b2'],
        'ln2_g': raw['ln2_g'], 'ln2_b': raw['ln2_b'],
    }


# ---------------- forward pass ----------------

@jax.jit
def text_bert_forward(params, inputs, masks):
    """inputs: (B, S) int32 token ids; masks: (B, S) bool.
       Returns last_hidden_state: (B, S, H) float32."""
    # embedding gather is plain-JAX glue; everything else is in the fused kernel
    we = jnp.take(params['word_emb'], inputs, axis=0)                 # (B, S, H)
    pe = params['pos_emb'][:S][None, :, :]                            # (1, S, H)
    te = params['type_emb'][0][None, None, :]                         # (1, 1, H)
    emb = (we + pe + te).astype(jnp.float32)                          # (B, S, H)

    # additive attention mask: 0 where attended, -1e9 where padded
    amask = ((1.0 - masks.astype(jnp.float32)) * jnp.float32(-1e9))[:, None, :]  # (B,1,S)

    w3 = lambda b: (0, 0, 0)   # layer-stacked weight slabs: same block every step
    w2d = lambda b: (0, 0)

    out = pl.pallas_call(
        bert_encoder_kernel,
        out_shape=jax.ShapeDtypeStruct((B, S, H), jnp.float32),
        grid=(B,),
        in_specs=[
            pl.BlockSpec((1, S, H), lambda b: (b, 0, 0)),             # emb
            pl.BlockSpec((1, 1, S), lambda b: (b, 0, 0)),             # additive mask
            pl.BlockSpec((1, H), w2d),                                # emb_ln_g
            pl.BlockSpec((1, H), w2d),                                # emb_ln_b
            pl.BlockSpec((N_LAYERS, H, 3 * H), w3),                   # wqkv (bf16)
            pl.BlockSpec((N_LAYERS, 1, 3 * H), w3),                   # bqkv
            pl.BlockSpec((N_LAYERS, H, H), w3),                       # wo
            pl.BlockSpec((N_LAYERS, 1, H), w3),                       # bo
            pl.BlockSpec((N_LAYERS, 1, H), w3),                       # ln1_g
            pl.BlockSpec((N_LAYERS, 1, H), w3),                       # ln1_b
            pl.BlockSpec((N_LAYERS, H, INTER), w3),                   # w1 (bf16)
            pl.BlockSpec((N_LAYERS, 1, INTER), w3),                   # b1
            pl.BlockSpec((N_LAYERS, INTER, H), w3),                   # w2 (bf16)
            pl.BlockSpec((N_LAYERS, 1, H), w3),                       # b2
            pl.BlockSpec((N_LAYERS, 1, H), w3),                       # ln2_g
            pl.BlockSpec((N_LAYERS, 1, H), w3),                       # ln2_b
        ],
        out_specs=pl.BlockSpec((1, S, H), lambda b: (b, 0, 0)),
        compiler_params=pltpu.CompilerParams(
            dimension_semantics=("parallel",),        # batch shards over v7x's 2 TCs
            vmem_limit_bytes=32 * 1024 * 1024),
    )(emb, amask,
      params['emb_ln_g'], params['emb_ln_b'],
      params['wqkv'], params['bqkv'], params['wo'], params['bo'],
      params['ln1_g'], params['ln1_b'], params['w1'], params['b1'],
      params['w2'], params['b2'], params['ln2_g'], params['ln2_b'])
    return out


class TextBertPallas:
    """Mirrors TextBert: frozen BERT + host-side input cache; forward returns
    last_hidden_state."""
    # TODO(synk): DataParallel wrapping has no single-kernel equivalent; omitted.

    def __init__(self, fix_bert_before=None, data_parallel=False):
        self.params = pack_params(init_params(jax.random.PRNGKey(42)))
        self.fix_bert_before = fix_bert_before
        self.freeze_all = not bool(fix_bert_before)
        if self.freeze_all:
            self.caches = {'inputs': None, 'masks': None, 'last_hidden_state': None}

    def __call__(self, inputs, masks):
        if not self.freeze_all:
            return text_bert_forward(self.params, inputs, masks)
        # Host-side cache key (numpy compare of tiny id/mask arrays; no sync on
        # the computed output). Keys on masks too, fixing the stale-mask bug.
        inp_np = np.asarray(inputs)
        msk_np = np.asarray(masks)
        c = self.caches
        hit = (c['inputs'] is not None
               and np.array_equal(inp_np, c['inputs'])
               and np.array_equal(msk_np, c['masks']))
        if not hit:
            c['inputs'] = inp_np
            c['masks'] = msk_np
            c['last_hidden_state'] = jax.lax.stop_gradient(
                text_bert_forward(self.params, inputs, masks))
        return c['last_hidden_state']


if __name__ == "__main__":
    key = jax.random.PRNGKey(0)
    inputs = jax.random.randint(key, (B, S), 0, VOCAB, dtype=jnp.int32)
    # batch 0 fully valid, batch 1 has 3 padded positions
    masks = jnp.array([[True] * S,
                       [True] * (S - 3) + [False] * 3], dtype=jnp.bool_)

    model = TextBertPallas(fix_bert_before=None)
    out = model(inputs, masks)                 # first call populates the cache
    out = model(inputs, masks)                 # second call hits the cache (no device sync)
    out = jax.block_until_ready(out)

    assert out.shape == (B, S, H) and out.dtype == jnp.float32
    assert bool(jnp.all(jnp.isfinite(out)))
    print("KERNEL_OK")
</pallas_src>

<mosaic_0001>
module attributes {stable_mosaic.version = 11 : i64} {
  func.func @bert_encoder_kernel(%arg0: i32, %arg1: memref<1x8x32xf32, #tpu.memory_space<vmem>>, %arg2: memref<1x1x8xf32, #tpu.memory_space<vmem>>, %arg3: memref<1x32xf32, #tpu.memory_space<vmem>>, %arg4: memref<1x32xf32, #tpu.memory_space<vmem>>, %arg5: memref<2x32x96xbf16, #tpu.memory_space<vmem>>, %arg6: memref<2x1x96xf32, #tpu.memory_space<vmem>>, %arg7: memref<2x32x32xf32, #tpu.memory_space<vmem>>, %arg8: memref<2x1x32xf32, #tpu.memory_space<vmem>>, %arg9: memref<2x1x32xf32, #tpu.memory_space<vmem>>, %arg10: memref<2x1x32xf32, #tpu.memory_space<vmem>>, %arg11: memref<2x32x64xbf16, #tpu.memory_space<vmem>>, %arg12: memref<2x1x64xf32, #tpu.memory_space<vmem>>, %arg13: memref<2x64x32xbf16, #tpu.memory_space<vmem>>, %arg14: memref<2x1x32xf32, #tpu.memory_space<vmem>>, %arg15: memref<2x1x32xf32, #tpu.memory_space<vmem>>, %arg16: memref<2x1x32xf32, #tpu.memory_space<vmem>>, %arg17: memref<1x8x32xf32, #tpu.memory_space<vmem>>) attributes {dimension_semantics = [#tpu.dimension_semantics<parallel>], iteration_bounds = array<i64: 2>, scalar_prefetch = 0 : i64, scratch_operands = 0 : i64, tpu.core_type = #tpu.core_type<tc>, window_params = [{transform_indices = @transform_0, window_bounds = array<i64: 1, 8, 32>}, {transform_indices = @transform_1, window_bounds = array<i64: 1, 1, 8>}, {pipeline_mode = #tpu.pipeline_mode<synchronous>, transform_indices = @transform_2, window_bounds = array<i64: 1, 32>}, {pipeline_mode = #tpu.pipeline_mode<synchronous>, transform_indices = @transform_3, window_bounds = array<i64: 1, 32>}, {pipeline_mode = #tpu.pipeline_mode<synchronous>, transform_indices = @transform_4, window_bounds = array<i64: 2, 32, 96>}, {pipeline_mode = #tpu.pipeline_mode<synchronous>, transform_indices = @transform_5, window_bounds = array<i64: 2, 1, 96>}, {pipeline_mode = #tpu.pipeline_mode<synchronous>, transform_indices = @transform_6, window_bounds = array<i64: 2, 32, 32>}, {pipeline_mode = #tpu.pipeline_mode<synchronous>, transform_indices = @transform_7, window_bounds = array<i64: 2, 1, 32>}, {pipeline_mode = #tpu.pipeline_mode<synchronous>, transform_indices = @transform_8, window_bounds = array<i64: 2, 1, 32>}, {pipeline_mode = #tpu.pipeline_mode<synchronous>, transform_indices = @transform_9, window_bounds = array<i64: 2, 1, 32>}, {pipeline_mode = #tpu.pipeline_mode<synchronous>, transform_indices = @transform_10, window_bounds = array<i64: 2, 32, 64>}, {pipeline_mode = #tpu.pipeline_mode<synchronous>, transform_indices = @transform_11, window_bounds = array<i64: 2, 1, 64>}, {pipeline_mode = #tpu.pipeline_mode<synchronous>, transform_indices = @transform_12, window_bounds = array<i64: 2, 64, 32>}, {pipeline_mode = #tpu.pipeline_mode<synchronous>, transform_indices = @transform_13, window_bounds = array<i64: 2, 1, 32>}, {pipeline_mode = #tpu.pipeline_mode<synchronous>, transform_indices = @transform_14, window_bounds = array<i64: 2, 1, 32>}, {pipeline_mode = #tpu.pipeline_mode<synchronous>, transform_indices = @transform_15, window_bounds = array<i64: 2, 1, 32>}, {transform_indices = @transform_16, window_bounds = array<i64: 1, 8, 32>}]} {
    %c0 = arith.constant 0 : index
    %c0_0 = arith.constant 0 : index
    %c0_1 = arith.constant 0 : index
    %0 = vector.load %arg2[%c0, %c0_0, %c0_1] : memref<1x1x8xf32, #tpu.memory_space<vmem>>, vector<1x1x8xf32>
    %1 = vector.shape_cast %0 : vector<1x1x8xf32> to vector<1x8xf32>
    %c0_2 = arith.constant 0 : index
    %c0_3 = arith.constant 0 : index
    %c0_4 = arith.constant 0 : index
    %2 = vector.load %arg1[%c0_2, %c0_3, %c0_4] : memref<1x8x32xf32, #tpu.memory_space<vmem>>, vector<1x8x32xf32>
    %3 = vector.shape_cast %2 : vector<1x8x32xf32> to vector<8x32xf32>
    %c0_5 = arith.constant 0 : index
    %c0_6 = arith.constant 0 : index
    %4 = vector.load %arg3[%c0_5, %c0_6] : memref<1x32xf32, #tpu.memory_space<vmem>>, vector<1x32xf32>
    %c0_7 = arith.constant 0 : index
    %c0_8 = arith.constant 0 : index
    %5 = vector.load %arg4[%c0_7, %c0_8] : memref<1x32xf32, #tpu.memory_space<vmem>>, vector<1x32xf32>
    %cst = arith.constant dense<0.000000e+00> : vector<8xf32>
    %6 = vector.multi_reduction <add>, %3, %cst [1] : vector<8x32xf32> to vector<8xf32>
    %7 = vector.shape_cast %6 : vector<8xf32> to vector<8x1xf32>
    %cst_9 = arith.constant 3.200000e+01 : f32
    %8 = vector.broadcast %cst_9 : f32 to vector<8x1xf32>
    %9 = arith.divf %7, %8 : vector<8x1xf32>
    %10 = vector.broadcast %9 : vector<8x1xf32> to vector<8x32xf32>
    %11 = arith.subf %3, %10 : vector<8x32xf32>
    %12 = arith.mulf %11, %11 : vector<8x32xf32>
    %cst_10 = arith.constant dense<0.000000e+00> : vector<8xf32>
    %13 = vector.multi_reduction <add>, %12, %cst_10 [1] : vector<8x32xf32> to vector<8xf32>
    %14 = vector.shape_cast %13 : vector<8xf32> to vector<8x1xf32>
    %cst_11 = arith.constant 3.200000e+01 : f32
    %15 = vector.broadcast %cst_11 : f32 to vector<8x1xf32>
    %16 = arith.divf %14, %15 : vector<8x1xf32>
    %17 = vector.broadcast %9 : vector<8x1xf32> to vector<8x32xf32>
    %18 = arith.subf %3, %17 : vector<8x32xf32>
    %cst_12 = arith.constant 9.99999996E-13 : f32
    %19 = vector.broadcast %cst_12 : f32 to vector<8x1xf32>
    %20 = arith.addf %16, %19 : vector<8x1xf32>
    %21 = math.rsqrt %20 : vector<8x1xf32>
    %22 = vector.broadcast %21 : vector<8x1xf32> to vector<8x32xf32>
    %23 = arith.mulf %18, %22 : vector<8x32xf32>
    %24 = vector.broadcast %4 : vector<1x32xf32> to vector<8x32xf32>
    %25 = arith.mulf %23, %24 : vector<8x32xf32>
    %26 = vector.broadcast %5 : vector<1x32xf32> to vector<8x32xf32>
    %27 = arith.addf %25, %26 : vector<8x32xf32>
    %28 = arith.truncf %27 : vector<8x32xf32> to vector<8x32xbf16>
    %c0_13 = arith.constant 0 : index
    %c0_14 = arith.constant 0 : index
    %c0_15 = arith.constant 0 : index
    %29 = vector.load %arg5[%c0_13, %c0_14, %c0_15] : memref<2x32x96xbf16, #tpu.memory_space<vmem>>, vector<1x32x96xbf16>
    %30 = vector.shape_cast %29 : vector<1x32x96xbf16> to vector<32x96xbf16>
    %cst_16 = arith.constant dense<0.000000e+00> : vector<8x96xf32>
    %31 = tpu.matmul %28, %30, %cst_16 {dimension_numbers = #tpu.dot_dimension_numbers<[1], [0], [0], [1], [0, 0, 1, 1], [], []>} : vector<8x32xbf16>, vector<32x96xbf16>, vector<8x96xf32> -> vector<8x96xf32>
    %c0_17 = arith.constant 0 : index
    %c0_18 = arith.constant 0 : index
    %c0_19 = arith.constant 0 : index
    %32 = vector.load %arg6[%c0_17, %c0_18, %c0_19] : memref<2x1x96xf32, #tpu.memory_space<vmem>>, vector<1x1x96xf32>
    %33 = vector.shape_cast %32 : vector<1x1x96xf32> to vector<1x96xf32>
    %34 = vector.broadcast %33 : vector<1x96xf32> to vector<8x96xf32>
    %35 = arith.addf %31, %34 : vector<8x96xf32>
    %c0_20 = arith.constant 0 : index
    %c0_21 = arith.constant 0 : index
    %c0_22 = arith.constant 0 : index
    %36 = vector.load %arg7[%c0_20, %c0_21, %c0_22] : memref<2x32x32xf32, #tpu.memory_space<vmem>>, vector<1x32x32xf32>
    %37 = vector.shape_cast %36 : vector<1x32x32xf32> to vector<32x32xf32>
    %cst_23 = arith.constant 0.000000e+00 : f32
    %38 = vector.broadcast %cst_23 : f32 to vector<8x32xf32>
    %39 = vector.extract_strided_slice %35 {offsets = [0, 0], sizes = [8, 8], strides = [1, 1]} : vector<8x96xf32> to vector<8x8xf32>
    %40 = vector.extract_strided_slice %35 {offsets = [0, 32], sizes = [8, 8], strides = [1, 1]} : vector<8x96xf32> to vector<8x8xf32>
    %41 = vector.extract_strided_slice %35 {offsets = [0, 64], sizes = [8, 8], strides = [1, 1]} : vector<8x96xf32> to vector<8x8xf32>
    %cst_24 = arith.constant dense<0.000000e+00> : vector<8x8xf32>
    %42 = tpu.matmul %39, %40, %cst_24 {dimension_numbers = #tpu.dot_dimension_numbers<[1], [1], [0], [0], [0, 0, 1, 0], [], []>} : vector<8x8xf32>, vector<8x8xf32>, vector<8x8xf32> -> vector<8x8xf32>
    %43 = vector.broadcast %1 : vector<1x8xf32> to vector<8x8xf32>
    %44 = arith.addf %42, %43 : vector<8x8xf32>
    %cst_25 = arith.constant dense<0xFF800000> : vector<8xf32>
    %45 = vector.multi_reduction <maximumf>, %44, %cst_25 [1] : vector<8x8xf32> to vector<8xf32>
    %46 = vector.shape_cast %45 : vector<8xf32> to vector<8x1xf32>
    %47 = vector.broadcast %46 : vector<8x1xf32> to vector<8x8xf32>
    %48 = arith.subf %44, %47 : vector<8x8xf32>
    %49 = math.exp %48 : vector<8x8xf32>
    %cst_26 = arith.constant dense<0.000000e+00> : vector<8xf32>
    %50 = vector.multi_reduction <add>, %49, %cst_26 [1] : vector<8x8xf32> to vector<8xf32>
    %51 = vector.shape_cast %50 : vector<8xf32> to vector<8x1xf32>
    %52 = tpu.reciprocal %51 {approx = true} : vector<8x1xf32> -> vector<8x1xf32>
    %53 = vector.broadcast %52 : vector<8x1xf32> to vector<8x8xf32>
    %54 = arith.mulf %49, %53 : vector<8x8xf32>
    %cst_27 = arith.constant dense<0.000000e+00> : vector<8x8xf32>
    %55 = tpu.matmul %54, %41, %cst_27 {dimension_numbers = #tpu.dot_dimension_numbers<[1], [0], [0], [1], [0, 0, 1, 1], [], []>} : vector<8x8xf32>, vector<8x8xf32>, vector<8x8xf32> -> vector<8x8xf32>
    %56 = vector.extract_strided_slice %37 {offsets = [0, 0], sizes = [8, 32], strides = [1, 1]} : vector<32x32xf32> to vector<8x32xf32>
    %cst_28 = arith.constant dense<0.000000e+00> : vector<8x32xf32>
    %57 = tpu.matmul %55, %56, %cst_28 {dimension_numbers = #tpu.dot_dimension_numbers<[1], [0], [0], [1], [0, 0, 1, 1], [], []>} : vector<8x8xf32>, vector<8x32xf32>, vector<8x32xf32> -> vector<8x32xf32>
    %58 = arith.addf %38, %57 : vector<8x32xf32>
    %59 = vector.extract_strided_slice %35 {offsets = [0, 8], sizes = [8, 8], strides = [1, 1]} : vector<8x96xf32> to vector<8x8xf32>
    %60 = vector.extract_strided_slice %35 {offsets = [0, 40], sizes = [8, 8], strides = [1, 1]} : vector<8x96xf32> to vector<8x8xf32>
    %61 = vector.extract_strided_slice %35 {offsets = [0, 72], sizes = [8, 8], strides = [1, 1]} : vector<8x96xf32> to vector<8x8xf32>
    %cst_29 = arith.constant dense<0.000000e+00> : vector<8x8xf32>
    %62 = tpu.matmul %59, %60, %cst_29 {dimension_numbers = #tpu.dot_dimension_numbers<[1], [1], [0], [0], [0, 0, 1, 0], [], []>} : vector<8x8xf32>, vector<8x8xf32>, vector<8x8xf32> -> vector<8x8xf32>
    %63 = vector.broadcast %1 : vector<1x8xf32> to vector<8x8xf32>
    %64 = arith.addf %62, %63 : vector<8x8xf32>
    %cst_30 = arith.constant dense<0xFF800000> : vector<8xf32>
    %65 = vector.multi_reduction <maximumf>, %64, %cst_30 [1] : vector<8x8xf32> to vector<8xf32>
    %66 = vector.shape_cast %65 : vector<8xf32> to vector<8x1xf32>
    %67 = vector.broadcast %66 : vector<8x1xf32> to vector<8x8xf32>
    %68 = arith.subf %64, %67 : vector<8x8xf32>
    %69 = math.exp %68 : vector<8x8xf32>
    %cst_31 = arith.constant dense<0.000000e+00> : vector<8xf32>
    %70 = vector.multi_reduction <add>, %69, %cst_31 [1] : vector<8x8xf32> to vector<8xf32>
    %71 = vector.shape_cast %70 : vector<8xf32> to vector<8x1xf32>
    %72 = tpu.reciprocal %71 {approx = true} : vector<8x1xf32> -> vector<8x1xf32>
    %73 = vector.broadcast %72 : vector<8x1xf32> to vector<8x8xf32>
    %74 = arith.mulf %69, %73 : vector<8x8xf32>
    %cst_32 = arith.constant dense<0.000000e+00> : vector<8x8xf32>
    %75 = tpu.matmul %74, %61, %cst_32 {dimension_numbers = #tpu.dot_dimension_numbers<[1], [0], [0], [1], [0, 0, 1, 1], [], []>} : vector<8x8xf32>, vector<8x8xf32>, vector<8x8xf32> -> vector<8x8xf32>
    %76 = vector.extract_strided_slice %37 {offsets = [8, 0], sizes = [8, 32], strides = [1, 1]} : vector<32x32xf32> to vector<8x32xf32>
    %cst_33 = arith.constant dense<0.000000e+00> : vector<8x32xf32>
    %77 = tpu.matmul %75, %76, %cst_33 {dimension_numbers = #tpu.dot_dimension_numbers<[1], [0], [0], [1], [0, 0, 1, 1], [], []>} : vector<8x8xf32>, vector<8x32xf32>, vector<8x32xf32> -> vector<8x32xf32>
    %78 = arith.addf %58, %77 : vector<8x32xf32>
    %79 = vector.extract_strided_slice %35 {offsets = [0, 16], sizes = [8, 8], strides = [1, 1]} : vector<8x96xf32> to vector<8x8xf32>
    %80 = vector.extract_strided_slice %35 {offsets = [0, 48], sizes = [8, 8], strides = [1, 1]} : vector<8x96xf32> to vector<8x8xf32>
    %81 = vector.extract_strided_slice %35 {offsets = [0, 80], sizes = [8, 8], strides = [1, 1]} : vector<8x96xf32> to vector<8x8xf32>
    %cst_34 = arith.constant dense<0.000000e+00> : vector<8x8xf32>
    %82 = tpu.matmul %79, %80, %cst_34 {dimension_numbers = #tpu.dot_dimension_numbers<[1], [1], [0], [0], [0, 0, 1, 0], [], []>} : vector<8x8xf32>, vector<8x8xf32>, vector<8x8xf32> -> vector<8x8xf32>
    %83 = vector.broadcast %1 : vector<1x8xf32> to vector<8x8xf32>
    %84 = arith.addf %82, %83 : vector<8x8xf32>
    %cst_35 = arith.constant dense<0xFF800000> : vector<8xf32>
    %85 = vector.multi_reduction <maximumf>, %84, %cst_35 [1] : vector<8x8xf32> to vector<8xf32>
    %86 = vector.shape_cast %85 : vector<8xf32> to vector<8x1xf32>
    %87 = vector.broadcast %86 : vector<8x1xf32> to vector<8x8xf32>
    %88 = arith.subf %84, %87 : vector<8x8xf32>
    %89 = math.exp %88 : vector<8x8xf32>
    %cst_36 = arith.constant dense<0.000000e+00> : vector<8xf32>
    %90 = vector.multi_reduction <add>, %89, %cst_36 [1] : vector<8x8xf32> to vector<8xf32>
    %91 = vector.shape_cast %90 : vector<8xf32> to vector<8x1xf32>
    %92 = tpu.reciprocal %91 {approx = true} : vector<8x1xf32> -> vector<8x1xf32>
    %93 = vector.broadcast %92 : vector<8x1xf32> to vector<8x8xf32>
    %94 = arith.mulf %89, %93 : vector<8x8xf32>
    %cst_37 = arith.constant dense<0.000000e+00> : vector<8x8xf32>
    %95 = tpu.matmul %94, %81, %cst_37 {dimension_numbers = #tpu.dot_dimension_numbers<[1], [0], [0], [1], [0, 0, 1, 1], [], []>} : vector<8x8xf32>, vector<8x8xf32>, vector<8x8xf32> -> vector<8x8xf32>
    %96 = vector.extract_strided_slice %37 {offsets = [16, 0], sizes = [8, 32], strides = [1, 1]} : vector<32x32xf32> to vector<8x32xf32>
    %cst_38 = arith.constant dense<0.000000e+00> : vector<8x32xf32>
    %97 = tpu.matmul %95, %96, %cst_38 {dimension_numbers = #tpu.dot_dimension_numbers<[1], [0], [0], [1], [0, 0, 1, 1], [], []>} : vector<8x8xf32>, vector<8x32xf32>, vector<8x32xf32> -> vector<8x32xf32>
    %98 = arith.addf %78, %97 : vector<8x32xf32>
    %99 = vector.extract_strided_slice %35 {offsets = [0, 24], sizes = [8, 8], strides = [1, 1]} : vector<8x96xf32> to vector<8x8xf32>
    %100 = vector.extract_strided_slice %35 {offsets = [0, 56], sizes = [8, 8], strides = [1, 1]} : vector<8x96xf32> to vector<8x8xf32>
    %101 = vector.extract_strided_slice %35 {offsets = [0, 88], sizes = [8, 8], strides = [1, 1]} : vector<8x96xf32> to vector<8x8xf32>
    %cst_39 = arith.constant dense<0.000000e+00> : vector<8x8xf32>
    %102 = tpu.matmul %99, %100, %cst_39 {dimension_numbers = #tpu.dot_dimension_numbers<[1], [1], [0], [0], [0, 0, 1, 0], [], []>} : vector<8x8xf32>, vector<8x8xf32>, vector<8x8xf32> -> vector<8x8xf32>
    %103 = vector.broadcast %1 : vector<1x8xf32> to vector<8x8xf32>
    %104 = arith.addf %102, %103 : vector<8x8xf32>
    %cst_40 = arith.constant dense<0xFF800000> : vector<8xf32>
    %105 = vector.multi_reduction <maximumf>, %104, %cst_40 [1] : vector<8x8xf32> to vector<8xf32>
    %106 = vector.shape_cast %105 : vector<8xf32> to vector<8x1xf32>
    %107 = vector.broadcast %106 : vector<8x1xf32> to vector<8x8xf32>
    %108 = arith.subf %104, %107 : vector<8x8xf32>
    %109 = math.exp %108 : vector<8x8xf32>
    %cst_41 = arith.constant dense<0.000000e+00> : vector<8xf32>
    %110 = vector.multi_reduction <add>, %109, %cst_41 [1] : vector<8x8xf32> to vector<8xf32>
    %111 = vector.shape_cast %110 : vector<8xf32> to vector<8x1xf32>
    %112 = tpu.reciprocal %111 {approx = true} : vector<8x1xf32> -> vector<8x1xf32>
    %113 = vector.broadcast %112 : vector<8x1xf32> to vector<8x8xf32>
    %114 = arith.mulf %109, %113 : vector<8x8xf32>
    %cst_42 = arith.constant dense<0.000000e+00> : vector<8x8xf32>
    %115 = tpu.matmul %114, %101, %cst_42 {dimension_numbers = #tpu.dot_dimension_numbers<[1], [0], [0], [1], [0, 0, 1, 1], [], []>} : vector<8x8xf32>, vector<8x8xf32>, vector<8x8xf32> -> vector<8x8xf32>
    %116 = vector.extract_strided_slice %37 {offsets = [24, 0], sizes = [8, 32], strides = [1, 1]} : vector<32x32xf32> to vector<8x32xf32>
    %cst_43 = arith.constant dense<0.000000e+00> : vector<8x32xf32>
    %117 = tpu.matmul %115, %116, %cst_43 {dimension_numbers = #tpu.dot_dimension_numbers<[1], [0], [0], [1], [0, 0, 1, 1], [], []>} : vector<8x8xf32>, vector<8x32xf32>, vector<8x32xf32> -> vector<8x32xf32>
    %118 = arith.addf %98, %117 : vector<8x32xf32>
    %c0_44 = arith.constant 0 : index
    %c0_45 = arith.constant 0 : index
    %c0_46 = arith.constant 0 : index
    %119 = vector.load %arg8[%c0_44, %c0_45, %c0_46] : memref<2x1x32xf32, #tpu.memory_space<vmem>>, vector<1x1x32xf32>
    %120 = vector.shape_cast %119 : vector<1x1x32xf32> to vector<1x32xf32>
    %121 = vector.broadcast %120 : vector<1x32xf32> to vector<8x32xf32>
    %122 = arith.addf %118, %121 : vector<8x32xf32>
    %123 = arith.addf %122, %27 : vector<8x32xf32>
    %c0_47 = arith.constant 0 : index
    %c0_48 = arith.constant 0 : index
    %c0_49 = arith.constant 0 : index
    %124 = vector.load %arg9[%c0_47, %c0_48, %c0_49] : memref<2x1x32xf32, #tpu.memory_space<vmem>>, vector<1x1x32xf32>
    %125 = vector.shape_cast %124 : vector<1x1x32xf32> to vector<1x32xf32>
    %c0_50 = arith.constant 0 : index
    %c0_51 = arith.constant 0 : index
    %c0_52 = arith.constant 0 : index
    %126 = vector.load %arg10[%c0_50, %c0_51, %c0_52] : memref<2x1x32xf32, #tpu.memory_space<vmem>>, vector<1x1x32xf32>
    %127 = vector.shape_cast %126 : vector<1x1x32xf32> to vector<1x32xf32>
    %cst_53 = arith.constant dense<0.000000e+00> : vector<8xf32>
    %128 = vector.multi_reduction <add>, %123, %cst_53 [1] : vector<8x32xf32> to vector<8xf32>
    %129 = vector.shape_cast %128 : vector<8xf32> to vector<8x1xf32>
    %cst_54 = arith.constant 3.200000e+01 : f32
    %130 = vector.broadcast %cst_54 : f32 to vector<8x1xf32>
    %131 = arith.divf %129, %130 : vector<8x1xf32>
    %132 = vector.broadcast %131 : vector<8x1xf32> to vector<8x32xf32>
    %133 = arith.subf %123, %132 : vector<8x32xf32>
    %134 = arith.mulf %133, %133 : vector<8x32xf32>
    %cst_55 = arith.constant dense<0.000000e+00> : vector<8xf32>
    %135 = vector.multi_reduction <add>, %134, %cst_55 [1] : vector<8x32xf32> to vector<8xf32>
    %136 = vector.shape_cast %135 : vector<8xf32> to vector<8x1xf32>
    %cst_56 = arith.constant 3.200000e+01 : f32
    %137 = vector.broadcast %cst_56 : f32 to vector<8x1xf32>
    %138 = arith.divf %136, %137 : vector<8x1xf32>
    %139 = vector.broadcast %131 : vector<8x1xf32> to vector<8x32xf32>
    %140 = arith.subf %123, %139 : vector<8x32xf32>
    %cst_57 = arith.constant 9.99999996E-13 : f32
    %141 = vector.broadcast %cst_57 : f32 to vector<8x1xf32>
    %142 = arith.addf %138, %141 : vector<8x1xf32>
    %143 = math.rsqrt %142 : vector<8x1xf32>
    %144 = vector.broadcast %143 : vector<8x1xf32> to vector<8x32xf32>
    %145 = arith.mulf %140, %144 : vector<8x32xf32>
    %146 = vector.broadcast %125 : vector<1x32xf32> to vector<8x32xf32>
    %147 = arith.mulf %145, %146 : vector<8x32xf32>
    %148 = vector.broadcast %127 : vector<1x32xf32> to vector<8x32xf32>
    %149 = arith.addf %147, %148 : vector<8x32xf32>
    %150 = arith.truncf %149 : vector<8x32xf32> to vector<8x32xbf16>
    %c0_58 = arith.constant 0 : index
    %c0_59 = arith.constant 0 : index
    %c0_60 = arith.constant 0 : index
    %151 = vector.load %arg11[%c0_58, %c0_59, %c0_60] : memref<2x32x64xbf16, #tpu.memory_space<vmem>>, vector<1x32x64xbf16>
    %152 = vector.shape_cast %151 : vector<1x32x64xbf16> to vector<32x64xbf16>
    %cst_61 = arith.constant dense<0.000000e+00> : vector<8x64xf32>
    %153 = tpu.matmul %150, %152, %cst_61 {dimension_numbers = #tpu.dot_dimension_numbers<[1], [0], [0], [1], [0, 0, 1, 1], [], []>} : vector<8x32xbf16>, vector<32x64xbf16>, vector<8x64xf32> -> vector<8x64xf32>
    %c0_62 = arith.constant 0 : index
    %c0_63 = arith.constant 0 : index
    %c0_64 = arith.constant 0 : index
    %154 = vector.load %arg12[%c0_62, %c0_63, %c0_64] : memref<2x1x64xf32, #tpu.memory_space<vmem>>, vector<1x1x64xf32>
    %155 = vector.shape_cast %154 : vector<1x1x64xf32> to vector<1x64xf32>
    %156 = vector.broadcast %155 : vector<1x64xf32> to vector<8x64xf32>
    %157 = arith.addf %153, %156 : vector<8x64xf32>
    %cst_65 = arith.constant 5.000000e-01 : f32
    %158 = vector.broadcast %cst_65 : f32 to vector<8x64xf32>
    %159 = arith.mulf %158, %157 : vector<8x64xf32>
    %cst_66 = arith.constant 4.471500e-02 : f32
    %160 = vector.broadcast %cst_66 : f32 to vector<8x64xf32>
    %161 = arith.mulf %160, %157 : vector<8x64xf32>
    %162 = arith.mulf %161, %157 : vector<8x64xf32>
    %163 = arith.mulf %162, %157 : vector<8x64xf32>
    %164 = arith.addf %157, %163 : vector<8x64xf32>
    %cst_67 = arith.constant 0.797884583 : f32
    %165 = vector.broadcast %cst_67 : f32 to vector<8x64xf32>
    %166 = arith.mulf %165, %164 : vector<8x64xf32>
    %167 = math.tanh %166 : vector<8x64xf32>
    %cst_68 = arith.constant 1.000000e+00 : f32
    %168 = vector.broadcast %cst_68 : f32 to vector<8x64xf32>
    %169 = arith.addf %168, %167 : vector<8x64xf32>
    %170 = arith.mulf %159, %169 : vector<8x64xf32>
    %171 = arith.truncf %170 : vector<8x64xf32> to vector<8x64xbf16>
    %c0_69 = arith.constant 0 : index
    %c0_70 = arith.constant 0 : index
    %c0_71 = arith.constant 0 : index
    %172 = vector.load %arg13[%c0_69, %c0_70, %c0_71] : memref<2x64x32xbf16, #tpu.memory_space<vmem>>, vector<1x64x32xbf16>
    %173 = vector.shape_cast %172 : vector<1x64x32xbf16> to vector<64x32xbf16>
    %cst_72 = arith.constant dense<0.000000e+00> : vector<8x32xf32>
    %174 = tpu.matmul %171, %173, %cst_72 {dimension_numbers = #tpu.dot_dimension_numbers<[1], [0], [0], [1], [0, 0, 1, 1], [], []>} : vector<8x64xbf16>, vector<64x32xbf16>, vector<8x32xf32> -> vector<8x32xf32>
    %c0_73 = arith.constant 0 : index
    %c0_74 = arith.constant 0 : index
    %c0_75 = arith.constant 0 : index
    %175 = vector.load %arg14[%c0_73, %c0_74, %c0_75] : memref<2x1x32xf32, #tpu.memory_space<vmem>>, vector<1x1x32xf32>
    %176 = vector.shape_cast %175 : vector<1x1x32xf32> to vector<1x32xf32>
    %177 = vector.broadcast %176 : vector<1x32xf32> to vector<8x32xf32>
    %178 = arith.addf %174, %177 : vector<8x32xf32>
    %179 = arith.addf %178, %149 : vector<8x32xf32>
    %c0_76 = arith.constant 0 : index
    %c0_77 = arith.constant 0 : index
    %c0_78 = arith.constant 0 : index
    %180 = vector.load %arg15[%c0_76, %c0_77, %c0_78] : memref<2x1x32xf32, #tpu.memory_space<vmem>>, vector<1x1x32xf32>
    %181 = vector.shape_cast %180 : vector<1x1x32xf32> to vector<1x32xf32>
    %c0_79 = arith.constant 0 : index
    %c0_80 = arith.constant 0 : index
    %c0_81 = arith.constant 0 : index
    %182 = vector.load %arg16[%c0_79, %c0_80, %c0_81] : memref<2x1x32xf32, #tpu.memory_space<vmem>>, vector<1x1x32xf32>
    %183 = vector.shape_cast %182 : vector<1x1x32xf32> to vector<1x32xf32>
    %cst_82 = arith.constant dense<0.000000e+00> : vector<8xf32>
    %184 = vector.multi_reduction <add>, %179, %cst_82 [1] : vector<8x32xf32> to vector<8xf32>
    %185 = vector.shape_cast %184 : vector<8xf32> to vector<8x1xf32>
    %cst_83 = arith.constant 3.200000e+01 : f32
    %186 = vector.broadcast %cst_83 : f32 to vector<8x1xf32>
    %187 = arith.divf %185, %186 : vector<8x1xf32>
    %188 = vector.broadcast %187 : vector<8x1xf32> to vector<8x32xf32>
    %189 = arith.subf %179, %188 : vector<8x32xf32>
    %190 = arith.mulf %189, %189 : vector<8x32xf32>
    %cst_84 = arith.constant dense<0.000000e+00> : vector<8xf32>
    %191 = vector.multi_reduction <add>, %190, %cst_84 [1] : vector<8x32xf32> to vector<8xf32>
    %192 = vector.shape_cast %191 : vector<8xf32> to vector<8x1xf32>
    %cst_85 = arith.constant 3.200000e+01 : f32
    %193 = vector.broadcast %cst_85 : f32 to vector<8x1xf32>
    %194 = arith.divf %192, %193 : vector<8x1xf32>
    %195 = vector.broadcast %187 : vector<8x1xf32> to vector<8x32xf32>
    %196 = arith.subf %179, %195 : vector<8x32xf32>
    %cst_86 = arith.constant 9.99999996E-13 : f32
    %197 = vector.broadcast %cst_86 : f32 to vector<8x1xf32>
    %198 = arith.addf %194, %197 : vector<8x1xf32>
    %199 = math.rsqrt %198 : vector<8x1xf32>
    %200 = vector.broadcast %199 : vector<8x1xf32> to vector<8x32xf32>
    %201 = arith.mulf %196, %200 : vector<8x32xf32>
    %202 = vector.broadcast %181 : vector<1x32xf32> to vector<8x32xf32>
    %203 = arith.mulf %201, %202 : vector<8x32xf32>
    %204 = vector.broadcast %183 : vector<1x32xf32> to vector<8x32xf32>
    %205 = arith.addf %203, %204 : vector<8x32xf32>
    %206 = arith.truncf %205 : vector<8x32xf32> to vector<8x32xbf16>
    %c1 = arith.constant 1 : index
    %c0_87 = arith.constant 0 : index
    %c0_88 = arith.constant 0 : index
    %207 = vector.load %arg5[%c1, %c0_87, %c0_88] : memref<2x32x96xbf16, #tpu.memory_space<vmem>>, vector<1x32x96xbf16>
    %208 = vector.shape_cast %207 : vector<1x32x96xbf16> to vector<32x96xbf16>
    %cst_89 = arith.constant dense<0.000000e+00> : vector<8x96xf32>
    %209 = tpu.matmul %206, %208, %cst_89 {dimension_numbers = #tpu.dot_dimension_numbers<[1], [0], [0], [1], [0, 0, 1, 1], [], []>} : vector<8x32xbf16>, vector<32x96xbf16>, vector<8x96xf32> -> vector<8x96xf32>
    %c1_90 = arith.constant 1 : index
    %c0_91 = arith.constant 0 : index
    %c0_92 = arith.constant 0 : index
    %210 = vector.load %arg6[%c1_90, %c0_91, %c0_92] : memref<2x1x96xf32, #tpu.memory_space<vmem>>, vector<1x1x96xf32>
    %211 = vector.shape_cast %210 : vector<1x1x96xf32> to vector<1x96xf32>
    %212 = vector.broadcast %211 : vector<1x96xf32> to vector<8x96xf32>
    %213 = arith.addf %209, %212 : vector<8x96xf32>
    %c1_93 = arith.constant 1 : index
    %c0_94 = arith.constant 0 : index
    %c0_95 = arith.constant 0 : index
    %214 = vector.load %arg7[%c1_93, %c0_94, %c0_95] : memref<2x32x32xf32, #tpu.memory_space<vmem>>, vector<1x32x32xf32>
    %215 = vector.shape_cast %214 : vector<1x32x32xf32> to vector<32x32xf32>
    %cst_96 = arith.constant 0.000000e+00 : f32
    %216 = vector.broadcast %cst_96 : f32 to vector<8x32xf32>
    %217 = vector.extract_strided_slice %213 {offsets = [0, 0], sizes = [8, 8], strides = [1, 1]} : vector<8x96xf32> to vector<8x8xf32>
    %218 = vector.extract_strided_slice %213 {offsets = [0, 32], sizes = [8, 8], strides = [1, 1]} : vector<8x96xf32> to vector<8x8xf32>
    %219 = vector.extract_strided_slice %213 {offsets = [0, 64], sizes = [8, 8], strides = [1, 1]} : vector<8x96xf32> to vector<8x8xf32>
    %cst_97 = arith.constant dense<0.000000e+00> : vector<8x8xf32>
    %220 = tpu.matmul %217, %218, %cst_97 {dimension_numbers = #tpu.dot_dimension_numbers<[1], [1], [0], [0], [0, 0, 1, 0], [], []>} : vector<8x8xf32>, vector<8x8xf32>, vector<8x8xf32> -> vector<8x8xf32>
    %221 = vector.broadcast %1 : vector<1x8xf32> to vector<8x8xf32>
    %222 = arith.addf %220, %221 : vector<8x8xf32>
    %cst_98 = arith.constant dense<0xFF800000> : vector<8xf32>
    %223 = vector.multi_reduction <maximumf>, %222, %cst_98 [1] : vector<8x8xf32> to vector<8xf32>
    %224 = vector.shape_cast %223 : vector<8xf32> to vector<8x1xf32>
    %225 = vector.broadcast %224 : vector<8x1xf32> to vector<8x8xf32>
    %226 = arith.subf %222, %225 : vector<8x8xf32>
    %227 = math.exp %226 : vector<8x8xf32>
    %cst_99 = arith.constant dense<0.000000e+00> : vector<8xf32>
    %228 = vector.multi_reduction <add>, %227, %cst_99 [1] : vector<8x8xf32> to vector<8xf32>
    %229 = vector.shape_cast %228 : vector<8xf32> to vector<8x1xf32>
    %230 = tpu.reciprocal %229 {approx = true} : vector<8x1xf32> -> vector<8x1xf32>
    %231 = vector.broadcast %230 : vector<8x1xf32> to vector<8x8xf32>
    %232 = arith.mulf %227, %231 : vector<8x8xf32>
    %cst_100 = arith.constant dense<0.000000e+00> : vector<8x8xf32>
    %233 = tpu.matmul %232, %219, %cst_100 {dimension_numbers = #tpu.dot_dimension_numbers<[1], [0], [0], [1], [0, 0, 1, 1], [], []>} : vector<8x8xf32>, vector<8x8xf32>, vector<8x8xf32> -> vector<8x8xf32>
    %234 = vector.extract_strided_slice %215 {offsets = [0, 0], sizes = [8, 32], strides = [1, 1]} : vector<32x32xf32> to vector<8x32xf32>
    %cst_101 = arith.constant dense<0.000000e+00> : vector<8x32xf32>
    %235 = tpu.matmul %233, %234, %cst_101 {dimension_numbers = #tpu.dot_dimension_numbers<[1], [0], [0], [1], [0, 0, 1, 1], [], []>} : vector<8x8xf32>, vector<8x32xf32>, vector<8x32xf32> -> vector<8x32xf32>
    %236 = arith.addf %216, %235 : vector<8x32xf32>
    %237 = vector.extract_strided_slice %213 {offsets = [0, 8], sizes = [8, 8], strides = [1, 1]} : vector<8x96xf32> to vector<8x8xf32>
    %238 = vector.extract_strided_slice %213 {offsets = [0, 40], sizes = [8, 8], strides = [1, 1]} : vector<8x96xf32> to vector<8x8xf32>
    %239 = vector.extract_strided_slice %213 {offsets = [0, 72], sizes = [8, 8], strides = [1, 1]} : vector<8x96xf32> to vector<8x8xf32>
    %cst_102 = arith.constant dense<0.000000e+00> : vector<8x8xf32>
    %240 = tpu.matmul %237, %238, %cst_102 {dimension_numbers = #tpu.dot_dimension_numbers<[1], [1], [0], [0], [0, 0, 1, 0], [], []>} : vector<8x8xf32>, vector<8x8xf32>, vector<8x8xf32> -> vector<8x8xf32>
    %241 = vector.broadcast %1 : vector<1x8xf32> to vector<8x8xf32>
    %242 = arith.addf %240, %241 : vector<8x8xf32>
    %cst_103 = arith.constant dense<0xFF800000> : vector<8xf32>
    %243 = vector.multi_reduction <maximumf>, %242, %cst_103 [1] : vector<8x8xf32> to vector<8xf32>
    %244 = vector.shape_cast %243 : vector<8xf32> to vector<8x1xf32>
    %245 = vector.broadcast %244 : vector<8x1xf32> to vector<8x8xf32>
    %246 = arith.subf %242, %245 : vector<8x8xf32>
    %247 = math.exp %246 : vector<8x8xf32>
    %cst_104 = arith.constant dense<0.000000e+00> : vector<8xf32>
    %248 = vector.multi_reduction <add>, %247, %cst_104 [1] : vector<8x8xf32> to vector<8xf32>
    %249 = vector.shape_cast %248 : vector<8xf32> to vector<8x1xf32>
    %250 = tpu.reciprocal %249 {approx = true} : vector<8x1xf32> -> vector<8x1xf32>
    %251 = vector.broadcast %250 : vector<8x1xf32> to vector<8x8xf32>
    %252 = arith.mulf %247, %251 : vector<8x8xf32>
    %cst_105 = arith.constant dense<0.000000e+00> : vector<8x8xf32>
    %253 = tpu.matmul %252, %239, %cst_105 {dimension_numbers = #tpu.dot_dimension_numbers<[1], [0], [0], [1], [0, 0, 1, 1], [], []>} : vector<8x8xf32>, vector<8x8xf32>, vector<8x8xf32> -> vector<8x8xf32>
    %254 = vector.extract_strided_slice %215 {offsets = [8, 0], sizes = [8, 32], strides = [1, 1]} : vector<32x32xf32> to vector<8x32xf32>
    %cst_106 = arith.constant dense<0.000000e+00> : vector<8x32xf32>
    %255 = tpu.matmul %253, %254, %cst_106 {dimension_numbers = #tpu.dot_dimension_numbers<[1], [0], [0], [1], [0, 0, 1, 1], [], []>} : vector<8x8xf32>, vector<8x32xf32>, vector<8x32xf32> -> vector<8x32xf32>
    %256 = arith.addf %236, %255 : vector<8x32xf32>
    %257 = vector.extract_strided_slice %213 {offsets = [0, 16], sizes = [8, 8], strides = [1, 1]} : vector<8x96xf32> to vector<8x8xf32>
    %258 = vector.extract_strided_slice %213 {offsets = [0, 48], sizes = [8, 8], strides = [1, 1]} : vector<8x96xf32> to vector<8x8xf32>
    %259 = vector.extract_strided_slice %213 {offsets = [0, 80], sizes = [8, 8], strides = [1, 1]} : vector<8x96xf32> to vector<8x8xf32>
    %cst_107 = arith.constant dense<0.000000e+00> : vector<8x8xf32>
    %260 = tpu.matmul %257, %258, %cst_107 {dimension_numbers = #tpu.dot_dimension_numbers<[1], [1], [0], [0], [0, 0, 1, 0], [], []>} : vector<8x8xf32>, vector<8x8xf32>, vector<8x8xf32> -> vector<8x8xf32>
    %261 = vector.broadcast %1 : vector<1x8xf32> to vector<8x8xf32>
    %262 = arith.addf %260, %261 : vector<8x8xf32>
    %cst_108 = arith.constant dense<0xFF800000> : vector<8xf32>
    %263 = vector.multi_reduction <maximumf>, %262, %cst_108 [1] : vector<8x8xf32> to vector<8xf32>
    %264 = vector.shape_cast %263 : vector<8xf32> to vector<8x1xf32>
    %265 = vector.broadcast %264 : vector<8x1xf32> to vector<8x8xf32>
    %266 = arith.subf %262, %265 : vector<8x8xf32>
    %267 = math.exp %266 : vector<8x8xf32>
    %cst_109 = arith.constant dense<0.000000e+00> : vector<8xf32>
    %268 = vector.multi_reduction <add>, %267, %cst_109 [1] : vector<8x8xf32> to vector<8xf32>
    %269 = vector.shape_cast %268 : vector<8xf32> to vector<8x1xf32>
    %270 = tpu.reciprocal %269 {approx = true} : vector<8x1xf32> -> vector<8x1xf32>
    %271 = vector.broadcast %270 : vector<8x1xf32> to vector<8x8xf32>
    %272 = arith.mulf %267, %271 : vector<8x8xf32>
    %cst_110 = arith.constant dense<0.000000e+00> : vector<8x8xf32>
    %273 = tpu.matmul %272, %259, %cst_110 {dimension_numbers = #tpu.dot_dimension_numbers<[1], [0], [0], [1], [0, 0, 1, 1], [], []>} : vector<8x8xf32>, vector<8x8xf32>, vector<8x8xf32> -> vector<8x8xf32>
    %274 = vector.extract_strided_slice %215 {offsets = [16, 0], sizes = [8, 32], strides = [1, 1]} : vector<32x32xf32> to vector<8x32xf32>
    %cst_111 = arith.constant dense<0.000000e+00> : vector<8x32xf32>
    %275 = tpu.matmul %273, %274, %cst_111 {dimension_numbers = #tpu.dot_dimension_numbers<[1], [0], [0], [1], [0, 0, 1, 1], [], []>} : vector<8x8xf32>, vector<8x32xf32>, vector<8x32xf32> -> vector<8x32xf32>
    %276 = arith.addf %256, %275 : vector<8x32xf32>
    %277 = vector.extract_strided_slice %213 {offsets = [0, 24], sizes = [8, 8], strides = [1, 1]} : vector<8x96xf32> to vector<8x8xf32>
    %278 = vector.extract_strided_slice %213 {offsets = [0, 56], sizes = [8, 8], strides = [1, 1]} : vector<8x96xf32> to vector<8x8xf32>
    %279 = vector.extract_strided_slice %213 {offsets = [0, 88], sizes = [8, 8], strides = [1, 1]} : vector<8x96xf32> to vector<8x8xf32>
    %cst_112 = arith.constant dense<0.000000e+00> : vector<8x8xf32>
    %280 = tpu.matmul %277, %278, %cst_112 {dimension_numbers = #tpu.dot_dimension_numbers<[1], [1], [0], [0], [0, 0, 1, 0], [], []>} : vector<8x8xf32>, vector<8x8xf32>, vector<8x8xf32> -> vector<8x8xf32>
    %281 = vector.broadcast %1 : vector<1x8xf32> to vector<8x8xf32>
    %282 = arith.addf %280, %281 : vector<8x8xf32>
    %cst_113 = arith.constant dense<0xFF800000> : vector<8xf32>
    %283 = vector.multi_reduction <maximumf>, %282, %cst_113 [1] : vector<8x8xf32> to vector<8xf32>
    %284 = vector.shape_cast %283 : vector<8xf32> to vector<8x1xf32>
    %285 = vector.broadcast %284 : vector<8x1xf32> to vector<8x8xf32>
    %286 = arith.subf %282, %285 : vector<8x8xf32>
    %287 = math.exp %286 : vector<8x8xf32>
    %cst_114 = arith.constant dense<0.000000e+00> : vector<8xf32>
    %288 = vector.multi_reduction <add>, %287, %cst_114 [1] : vector<8x8xf32> to vector<8xf32>
    %289 = vector.shape_cast %288 : vector<8xf32> to vector<8x1xf32>
    %290 = tpu.reciprocal %289 {approx = true} : vector<8x1xf32> -> vector<8x1xf32>
    %291 = vector.broadcast %290 : vector<8x1xf32> to vector<8x8xf32>
    %292 = arith.mulf %287, %291 : vector<8x8xf32>
    %cst_115 = arith.constant dense<0.000000e+00> : vector<8x8xf32>
    %293 = tpu.matmul %292, %279, %cst_115 {dimension_numbers = #tpu.dot_dimension_numbers<[1], [0], [0], [1], [0, 0, 1, 1], [], []>} : vector<8x8xf32>, vector<8x8xf32>, vector<8x8xf32> -> vector<8x8xf32>
    %294 = vector.extract_strided_slice %215 {offsets = [24, 0], sizes = [8, 32], strides = [1, 1]} : vector<32x32xf32> to vector<8x32xf32>
    %cst_116 = arith.constant dense<0.000000e+00> : vector<8x32xf32>
    %295 = tpu.matmul %293, %294, %cst_116 {dimension_numbers = #tpu.dot_dimension_numbers<[1], [0], [0], [1], [0, 0, 1, 1], [], []>} : vector<8x8xf32>, vector<8x32xf32>, vector<8x32xf32> -> vector<8x32xf32>
    %296 = arith.addf %276, %295 : vector<8x32xf32>
    %c1_117 = arith.constant 1 : index
    %c0_118 = arith.constant 0 : index
    %c0_119 = arith.constant 0 : index
    %297 = vector.load %arg8[%c1_117, %c0_118, %c0_119] : memref<2x1x32xf32, #tpu.memory_space<vmem>>, vector<1x1x32xf32>
    %298 = vector.shape_cast %297 : vector<1x1x32xf32> to vector<1x32xf32>
    %299 = vector.broadcast %298 : vector<1x32xf32> to vector<8x32xf32>
    %300 = arith.addf %296, %299 : vector<8x32xf32>
    %301 = arith.addf %300, %205 : vector<8x32xf32>
    %c1_120 = arith.constant 1 : index
    %c0_121 = arith.constant 0 : index
    %c0_122 = arith.constant 0 : index
    %302 = vector.load %arg9[%c1_120, %c0_121, %c0_122] : memref<2x1x32xf32, #tpu.memory_space<vmem>>, vector<1x1x32xf32>
    %303 = vector.shape_cast %302 : vector<1x1x32xf32> to vector<1x32xf32>
    %c1_123 = arith.constant 1 : index
    %c0_124 = arith.constant 0 : index
    %c0_125 = arith.constant 0 : index
    %304 = vector.load %arg10[%c1_123, %c0_124, %c0_125] : memref<2x1x32xf32, #tpu.memory_space<vmem>>, vector<1x1x32xf32>
    %305 = vector.shape_cast %304 : vector<1x1x32xf32> to vector<1x32xf32>
    %cst_126 = arith.constant dense<0.000000e+00> : vector<8xf32>
    %306 = vector.multi_reduction <add>, %301, %cst_126 [1] : vector<8x32xf32> to vector<8xf32>
    %307 = vector.shape_cast %306 : vector<8xf32> to vector<8x1xf32>
    %cst_127 = arith.constant 3.200000e+01 : f32
    %308 = vector.broadcast %cst_127 : f32 to vector<8x1xf32>
    %309 = arith.divf %307, %308 : vector<8x1xf32>
    %310 = vector.broadcast %309 : vector<8x1xf32> to vector<8x32xf32>
    %311 = arith.subf %301, %310 : vector<8x32xf32>
    %312 = arith.mulf %311, %311 : vector<8x32xf32>
    %cst_128 = arith.constant dense<0.000000e+00> : vector<8xf32>
    %313 = vector.multi_reduction <add>, %312, %cst_128 [1] : vector<8x32xf32> to vector<8xf32>
    %314 = vector.shape_cast %313 : vector<8xf32> to vector<8x1xf32>
    %cst_129 = arith.constant 3.200000e+01 : f32
    %315 = vector.broadcast %cst_129 : f32 to vector<8x1xf32>
    %316 = arith.divf %314, %315 : vector<8x1xf32>
    %317 = vector.broadcast %309 : vector<8x1xf32> to vector<8x32xf32>
    %318 = arith.subf %301, %317 : vector<8x32xf32>
    %cst_130 = arith.constant 9.99999996E-13 : f32
    %319 = vector.broadcast %cst_130 : f32 to vector<8x1xf32>
    %320 = arith.addf %316, %319 : vector<8x1xf32>
    %321 = math.rsqrt %320 : vector<8x1xf32>
    %322 = vector.broadcast %321 : vector<8x1xf32> to vector<8x32xf32>
    %323 = arith.mulf %318, %322 : vector<8x32xf32>
    %324 = vector.broadcast %303 : vector<1x32xf32> to vector<8x32xf32>
    %325 = arith.mulf %323, %324 : vector<8x32xf32>
    %326 = vector.broadcast %305 : vector<1x32xf32> to vector<8x32xf32>
    %327 = arith.addf %325, %326 : vector<8x32xf32>
    %328 = arith.truncf %327 : vector<8x32xf32> to vector<8x32xbf16>
    %c1_131 = arith.constant 1 : index
    %c0_132 = arith.constant 0 : index
    %c0_133 = arith.constant 0 : index
    %329 = vector.load %arg11[%c1_131, %c0_132, %c0_133] : memref<2x32x64xbf16, #tpu.memory_space<vmem>>, vector<1x32x64xbf16>
    %330 = vector.shape_cast %329 : vector<1x32x64xbf16> to vector<32x64xbf16>
    %cst_134 = arith.constant dense<0.000000e+00> : vector<8x64xf32>
    %331 = tpu.matmul %328, %330, %cst_134 {dimension_numbers = #tpu.dot_dimension_numbers<[1], [0], [0], [1], [0, 0, 1, 1], [], []>} : vector<8x32xbf16>, vector<32x64xbf16>, vector<8x64xf32> -> vector<8x64xf32>
    %c1_135 = arith.constant 1 : index
    %c0_136 = arith.constant 0 : index
    %c0_137 = arith.constant 0 : index
    %332 = vector.load %arg12[%c1_135, %c0_136, %c0_137] : memref<2x1x64xf32, #tpu.memory_space<vmem>>, vector<1x1x64xf32>
    %333 = vector.shape_cast %332 : vector<1x1x64xf32> to vector<1x64xf32>
    %334 = vector.broadcast %333 : vector<1x64xf32> to vector<8x64xf32>
    %335 = arith.addf %331, %334 : vector<8x64xf32>
    %cst_138 = arith.constant 5.000000e-01 : f32
    %336 = vector.broadcast %cst_138 : f32 to vector<8x64xf32>
    %337 = arith.mulf %336, %335 : vector<8x64xf32>
    %cst_139 = arith.constant 4.471500e-02 : f32
    %338 = vector.broadcast %cst_139 : f32 to vector<8x64xf32>
    %339 = arith.mulf %338, %335 : vector<8x64xf32>
    %340 = arith.mulf %339, %335 : vector<8x64xf32>
    %341 = arith.mulf %340, %335 : vector<8x64xf32>
    %342 = arith.addf %335, %341 : vector<8x64xf32>
    %cst_140 = arith.constant 0.797884583 : f32
    %343 = vector.broadcast %cst_140 : f32 to vector<8x64xf32>
    %344 = arith.mulf %343, %342 : vector<8x64xf32>
    %345 = math.tanh %344 : vector<8x64xf32>
    %cst_141 = arith.constant 1.000000e+00 : f32
    %346 = vector.broadcast %cst_141 : f32 to vector<8x64xf32>
    %347 = arith.addf %346, %345 : vector<8x64xf32>
    %348 = arith.mulf %337, %347 : vector<8x64xf32>
    %349 = arith.truncf %348 : vector<8x64xf32> to vector<8x64xbf16>
    %c1_142 = arith.constant 1 : index
    %c0_143 = arith.constant 0 : index
    %c0_144 = arith.constant 0 : index
    %350 = vector.load %arg13[%c1_142, %c0_143, %c0_144] : memref<2x64x32xbf16, #tpu.memory_space<vmem>>, vector<1x64x32xbf16>
    %351 = vector.shape_cast %350 : vector<1x64x32xbf16> to vector<64x32xbf16>
    %cst_145 = arith.constant dense<0.000000e+00> : vector<8x32xf32>
    %352 = tpu.matmul %349, %351, %cst_145 {dimension_numbers = #tpu.dot_dimension_numbers<[1], [0], [0], [1], [0, 0, 1, 1], [], []>} : vector<8x64xbf16>, vector<64x32xbf16>, vector<8x32xf32> -> vector<8x32xf32>
    %c1_146 = arith.constant 1 : index
    %c0_147 = arith.constant 0 : index
    %c0_148 = arith.constant 0 : index
    %353 = vector.load %arg14[%c1_146, %c0_147, %c0_148] : memref<2x1x32xf32, #tpu.memory_space<vmem>>, vector<1x1x32xf32>
    %354 = vector.shape_cast %353 : vector<1x1x32xf32> to vector<1x32xf32>
    %355 = vector.broadcast %354 : vector<1x32xf32> to vector<8x32xf32>
    %356 = arith.addf %352, %355 : vector<8x32xf32>
    %357 = arith.addf %356, %327 : vector<8x32xf32>
    %c1_149 = arith.constant 1 : index
    %c0_150 = arith.constant 0 : index
    %c0_151 = arith.constant 0 : index
    %358 = vector.load %arg15[%c1_149, %c0_150, %c0_151] : memref<2x1x32xf32, #tpu.memory_space<vmem>>, vector<1x1x32xf32>
    %359 = vector.shape_cast %358 : vector<1x1x32xf32> to vector<1x32xf32>
    %c1_152 = arith.constant 1 : index
    %c0_153 = arith.constant 0 : index
    %c0_154 = arith.constant 0 : index
    %360 = vector.load %arg16[%c1_152, %c0_153, %c0_154] : memref<2x1x32xf32, #tpu.memory_space<vmem>>, vector<1x1x32xf32>
    %361 = vector.shape_cast %360 : vector<1x1x32xf32> to vector<1x32xf32>
    %cst_155 = arith.constant dense<0.000000e+00> : vector<8xf32>
    %362 = vector.multi_reduction <add>, %357, %cst_155 [1] : vector<8x32xf32> to vector<8xf32>
    %363 = vector.shape_cast %362 : vector<8xf32> to vector<8x1xf32>
    %cst_156 = arith.constant 3.200000e+01 : f32
    %364 = vector.broadcast %cst_156 : f32 to vector<8x1xf32>
    %365 = arith.divf %363, %364 : vector<8x1xf32>
    %366 = vector.broadcast %365 : vector<8x1xf32> to vector<8x32xf32>
    %367 = arith.subf %357, %366 : vector<8x32xf32>
    %368 = arith.mulf %367, %367 : vector<8x32xf32>
    %cst_157 = arith.constant dense<0.000000e+00> : vector<8xf32>
    %369 = vector.multi_reduction <add>, %368, %cst_157 [1] : vector<8x32xf32> to vector<8xf32>
    %370 = vector.shape_cast %369 : vector<8xf32> to vector<8x1xf32>
    %cst_158 = arith.constant 3.200000e+01 : f32
    %371 = vector.broadcast %cst_158 : f32 to vector<8x1xf32>
    %372 = arith.divf %370, %371 : vector<8x1xf32>
    %373 = vector.broadcast %365 : vector<8x1xf32> to vector<8x32xf32>
    %374 = arith.subf %357, %373 : vector<8x32xf32>
    %cst_159 = arith.constant 9.99999996E-13 : f32
    %375 = vector.broadcast %cst_159 : f32 to vector<8x1xf32>
    %376 = arith.addf %372, %375 : vector<8x1xf32>
    %377 = math.rsqrt %376 : vector<8x1xf32>
    %378 = vector.broadcast %377 : vector<8x1xf32> to vector<8x32xf32>
    %379 = arith.mulf %374, %378 : vector<8x32xf32>
    %380 = vector.broadcast %359 : vector<1x32xf32> to vector<8x32xf32>
    %381 = arith.mulf %379, %380 : vector<8x32xf32>
    %382 = vector.broadcast %361 : vector<1x32xf32> to vector<8x32xf32>
    %383 = arith.addf %381, %382 : vector<8x32xf32>
    %c0_160 = arith.constant 0 : index
    %c0_161 = arith.constant 0 : index
    %c0_162 = arith.constant 0 : index
    %384 = vector.load %arg17[%c0_160, %c0_161, %c0_162] : memref<1x8x32xf32, #tpu.memory_space<vmem>>, vector<1x8x32xf32>
    %385 = vector.shape_cast %384 : vector<1x8x32xf32> to vector<8x32xf32>
    %386 = vector.shape_cast %383 : vector<8x32xf32> to vector<1x8x32xf32>
    tpu.vector_store %arg17[%c0_160, %c0_161, %c0_162], %386 {strides = array<i32>} : memref<1x8x32xf32, #tpu.memory_space<vmem>>, vector<1x8x32xf32>,
    return
  }
  func.func @transform_0(%arg0: i32) -> (i32, i32, i32) {
    %c0_i32 = arith.constant 0 : i32
    %c0_i32_0 = arith.constant 0 : i32
    %c0_i32_1 = arith.constant 0 : i32
    return %arg0, %c0_i32, %c0_i32_0 : i32, i32, i32
  }
  func.func @transform_1(%arg0: i32) -> (i32, i32, i32) {
    %c0_i32 = arith.constant 0 : i32
    %c0_i32_0 = arith.constant 0 : i32
    %c0_i32_1 = arith.constant 0 : i32
    return %arg0, %c0_i32, %c0_i32_0 : i32, i32, i32
  }
  func.func @transform_2(%arg0: i32) -> (i32, i32) {
    %c0_i32 = arith.constant 0 : i32
    %c0_i32_0 = arith.constant 0 : i32
    %c0_i32_1 = arith.constant 0 : i32
    return %c0_i32, %c0_i32_0 : i32, i32
  }
  func.func @transform_3(%arg0: i32) -> (i32, i32) {
    %c0_i32 = arith.constant 0 : i32
    %c0_i32_0 = arith.constant 0 : i32
    %c0_i32_1 = arith.constant 0 : i32
    return %c0_i32, %c0_i32_0 : i32, i32
  }
  func.func @transform_4(%arg0: i32) -> (i32, i32, i32) {
    %c0_i32 = arith.constant 0 : i32
    %c0_i32_0 = arith.constant 0 : i32
    %c0_i32_1 = arith.constant 0 : i32
    %c0_i32_2 = arith.constant 0 : i32
    return %c0_i32, %c0_i32_0, %c0_i32_1 : i32, i32, i32
  }
  func.func @transform_5(%arg0: i32) -> (i32, i32, i32) {
    %c0_i32 = arith.constant 0 : i32
    %c0_i32_0 = arith.constant 0 : i32
    %c0_i32_1 = arith.constant 0 : i32
    %c0_i32_2 = arith.constant 0 : i32
    return %c0_i32, %c0_i32_0, %c0_i32_1 : i32, i32, i32
  }
  func.func @transform_6(%arg0: i32) -> (i32, i32, i32) {
    %c0_i32 = arith.constant 0 : i32
    %c0_i32_0 = arith.constant 0 : i32
    %c0_i32_1 = arith.constant 0 : i32
    %c0_i32_2 = arith.constant 0 : i32
    return %c0_i32, %c0_i32_0, %c0_i32_1 : i32, i32, i32
  }
  func.func @transform_7(%arg0: i32) -> (i32, i32, i32) {
    %c0_i32 = arith.constant 0 : i32
    %c0_i32_0 = arith.constant 0 : i32
    %c0_i32_1 = arith.constant 0 : i32
    %c0_i32_2 = arith.constant 0 : i32
    return %c0_i32, %c0_i32_0, %c0_i32_1 : i32, i32, i32
  }
  func.func @transform_8(%arg0: i32) -> (i32, i32, i32) {
    %c0_i32 = arith.constant 0 : i32
    %c0_i32_0 = arith.constant 0 : i32
    %c0_i32_1 = arith.constant 0 : i32
    %c0_i32_2 = arith.constant 0 : i32
    return %c0_i32, %c0_i32_0, %c0_i32_1 : i32, i32, i32
  }
  func.func @transform_9(%arg0: i32) -> (i32, i32, i32) {
    %c0_i32 = arith.constant 0 : i32
    %c0_i32_0 = arith.constant 0 : i32
    %c0_i32_1 = arith.constant 0 : i32
    %c0_i32_2 = arith.constant 0 : i32
    return %c0_i32, %c0_i32_0, %c0_i32_1 : i32, i32, i32
  }
  func.func @transform_10(%arg0: i32) -> (i32, i32, i32) {
    %c0_i32 = arith.constant 0 : i32
    %c0_i32_0 = arith.constant 0 : i32
    %c0_i32_1 = arith.constant 0 : i32
    %c0_i32_2 = arith.constant 0 : i32
    return %c0_i32, %c0_i32_0, %c0_i32_1 : i32, i32, i32
  }
  func.func @transform_11(%arg0: i32) -> (i32, i32, i32) {
    %c0_i32 = arith.constant 0 : i32
    %c0_i32_0 = arith.constant 0 : i32
    %c0_i32_1 = arith.constant 0 : i32
    %c0_i32_2 = arith.constant 0 : i32
    return %c0_i32, %c0_i32_0, %c0_i32_1 : i32, i32, i32
  }
  func.func @transform_12(%arg0: i32) -> (i32, i32, i32) {
    %c0_i32 = arith.constant 0 : i32
    %c0_i32_0 = arith.constant 0 : i32
    %c0_i32_1 = arith.constant 0 : i32
    %c0_i32_2 = arith.constant 0 : i32
    return %c0_i32, %c0_i32_0, %c0_i32_1 : i32, i32, i32
  }
  func.func @transform_13(%arg0: i32) -> (i32, i32, i32) {
    %c0_i32 = arith.constant 0 : i32
    %c0_i32_0 = arith.constant 0 : i32
    %c0_i32_1 = arith.constant 0 : i32
    %c0_i32_2 = arith.constant 0 : i32
    return %c0_i32, %c0_i32_0, %c0_i32_1 : i32, i32, i32
  }
  func.func @transform_14(%arg0: i32) -> (i32, i32, i32) {
    %c0_i32 = arith.constant 0 : i32
    %c0_i32_0 = arith.constant 0 : i32
    %c0_i32_1 = arith.constant 0 : i32
    %c0_i32_2 = arith.constant 0 : i32
    return %c0_i32, %c0_i32_0, %c0_i32_1 : i32, i32, i32
  }
  func.func @transform_15(%arg0: i32) -> (i32, i32, i32) {
    %c0_i32 = arith.constant 0 : i32
    %c0_i32_0 = arith.constant 0 : i32
    %c0_i32_1 = arith.constant 0 : i32
    %c0_i32_2 = arith.constant 0 : i32
    return %c0_i32, %c0_i32_0, %c0_i32_1 : i32, i32, i32
  }
  func.func @transform_16(%arg0: i32) -> (i32, i32, i32) {
    %c0_i32 = arith.constant 0 : i32
    %c0_i32_0 = arith.constant 0 : i32
    %c0_i32_1 = arith.constant 0 : i32
    return %arg0, %c0_i32, %c0_i32_0 : i32, i32, i32
  }
}

</mosaic_0001>

<bundles_post_ra>
// kernel: text_bert_forward.1
= control target key start
LH: loop header
LB: loop body
LE: loop exit
PB: predicated region body
PF: predicated region fallthrough
CT: control target
= control target key end

     0   :  { %s4272_s0 = inlined_call_operand.vmem [shape: f32[2,8,32], index: 0, kind: input, shape index: {}]   ;;  %s4273_s1 = inlined_call_operand.vmem [shape: f32[2,1,8], index: 1, kind: input, shape index: {}]   ;;  %s4274_s2 = inlined_call_operand.vmem [shape: f32[1,32], index: 2, kind: input, shape index: {}]   ;;  %s4275_s3 = inlined_call_operand.vmem [shape: f32[1,32], index: 3, kind: input, shape index: {}]   ;;  %s4276_s4 = inlined_call_operand.vmem [shape: bf16[2,32,96], index: 4, kind: input, shape index: {}]   ;;  %s4277_s5 = inlined_call_operand.vmem [shape: f32[2,1,96], index: 5, kind: input, shape index: {}]   ;;  %s4278_s6 = inlined_call_operand.vmem [shape: f32[2,32,32], index: 6, kind: input, shape index: {}]   ;;  %s4279_s7 = inlined_call_operand.vmem [shape: f32[2,1,32], index: 7, kind: input, shape index: {}]   ;;  %s4280_s8 = inlined_call_operand.vmem [shape: f32[2,1,32], index: 8, kind: input, shape index: {}]   ;;  %s4281_s9 = inlined_call_operand.vmem [shape: f32[2,1,32], index: 9, kind: input, shape index: {}]   ;;  %s4282_s10 = inlined_call_operand.vmem [shape: bf16[2,32,64], index: 10, kind: input, shape index: {}]   ;;  %s4283_s11 = inlined_call_operand.vmem [shape: f32[2,1,64], index: 11, kind: input, shape index: {}]   ;;  %s4284_s12 = inlined_call_operand.vmem [shape: bf16[2,64,32], index: 12, kind: input, shape index: {}]   ;;  %s4285_s13 = inlined_call_operand.vmem [shape: f32[2,1,32], index: 13, kind: input, shape index: {}]   ;;  %s4286_s14 = inlined_call_operand.vmem [shape: f32[2,1,32], index: 14, kind: input, shape index: {}]   ;;  %s4287_s15 = inlined_call_operand.vmem [shape: f32[2,1,32], index: 15, kind: input, shape index: {}]   ;;  %s4288_s16 = inlined_call_operand.hbm [shape: f32[2,8,32], index: 16, kind: output, shape index: {}]  }
   0x1   :  { %4301 = sst [smem:[#allocation7_spill]] %s4272_s0 }
   0x2   :  { %4302 = sst [smem:[#allocation8_spill]] %s4273_s1 }
   0x3   :  { %4303 = sst [smem:[#allocation9_spill]] %s4274_s2 }
   0x4   :  { %4304 = sst [smem:[#allocation10_spill]] %s4275_s3 }
   0x5   :  { %4305 = sst [smem:[#allocation11_spill]] %s4276_s4 }
   0x6   :  { %21 = vsyncpa [#allocation3], 0 }
   0x7   :  { %23 = vsyncpa [#allocation3 + $0x1], 0  ;;  %s3804_s21 = smov 0   ;;  %s3806_s22 = smov 0  }
   0x8   :  { %s3808_s23 = smov 0   ;;  %s3810_s24 = smov 0  }
   0x9 LB: > { %4306 = sst [smem:[#allocation5_spill]] %s3699_s23  ;;  %s3825_s25 = sadd.s32 4294967295, %s3703_s24   ;;  %s3703_s24 = sphi %s3810_s24, %s4330_s24   ;;  %s3699_s23 = sphi %s3808_s23, %s4327_s23   ;;  %s3695_s22 = sphi %s3806_s22, %s4329_s22   ;;  %s3691_s21 = sphi %s3804_s21, %s4328_s21  }
   0xa   : > { %s3170_s26 = sadd.s32 4294967294, %s3703_s24   ;;  %s3829_s27 = sadd.s32 1, %s3703_s24  }
   0xb   : > { %s382_s28 = sadd.s32 1, %s3699_s23  ;;  %s379_s29 = ssub.s32 %s3703_s24, %s3829_s27 }
   0xc   : > { %p392_p0 = scmp.ne.s32.totalorder %s3699_s23, %s3695_s22  ;;  %p380_p1 = scmp.eq.s32.totalorder %s379_s29, 0 }
   0xd   : > { %p393_p2 = scmp.eq.s32.totalorder %s3825_s25, 1  ;;  %p398_p3 = scmp.ne.s32.totalorder %s3695_s22, %s3691_s21 }
   0xe   : > { %p399_p4 = scmp.eq.s32.totalorder %s3170_s26, 1  ;;  %p3173_p7 = scmp.ge.s32.totalorder %s3703_s24, 1 }
   0xf   : > { %s3840_s30 = scalar_select %p380_p1, %s3699_s23, %s382_s28  }
  0x10   : > { %p3842_p5 = por %p393_p2, %p392_p0  ;;  %p3846_p6 = por %p399_p4, %p398_p3 }
  0x11   : > { %4307 = sst [smem:[#allocation6_spill]] %s3840_s30  ;;  %p472_p8 = scmp.lt.s32.totalorder %s3703_s24, 3 }
  0x13   : > { %p473_p9 = pnand %p3173_p7, %p472_p8 }
  0x14   : > { %p524_p10 = scmp.lt.s32.totalorder (!%p473_p9), %s3825_s25, 1  ;;  %vm536_vm0 = vcmask (!%p473_p9), 261120   ;;  %s4310_s28 = sld [smem:[#allocation7_spill]] (!%p473_p9)  ;;  %v3705_v8 = vmov (!%p473_p9), 0.0   ;;  %vm3706_vm1 = vmmov (!%p473_p9), 0   ;;  %vm645_vm2 = vcmask (!%p473_p9), 64512  }
  0x15   : > { %476 = sbr.rel (%p473_p9) target bundleno = 8202 (0x200a), region = 84  ;;  %s4311_s4 = sld [smem:[#allocation11_spill]] (!%p473_p9)  ;;  %3351 = vmatprep.subr.bf16.mxu0 (!%p473_p9), %v3705_v8  ;;  %3359 = vmatprep.subr.mxu1 (!%p473_p9), %v3705_v8  ;;  %v3178_v20 = vld [vmem:[%s4277_s5] ss:$0 sm:$0xff] (!%p473_p9)  ;;  %v633_v62 = vld [vmem:[%s4278_s6 + $0x8] sm:$0xff] (!%p473_p9)  ;;  %vm1750_vm3 = vcmask (!%p473_p9), 523264  }
  0x16   : > { %3355 = vmatprep.mubr.msk.bf16.mxu0 (!%p473_p9), %vm3706_vm1, %v3705_v8  ;;  %3361 = vmatprep.mubr.msk.f32.mxu1 (!%p473_p9), %vm3706_vm1, %v3705_v8  ;;  %s4312_s2 = sld [smem:[#allocation9_spill]] (!%p473_p9)  ;;  %s4313_s3 = sld [smem:[#allocation10_spill]] (!%p473_p9)  ;;  %v632_v43 = vld [vmem:[%s4278_s6] sm:$0xff] (!%p473_p9) }
  0x17   : > { %s4290_s20 = smov (!%p473_p9), 64   ;;  %s4299_s23 = smov (!%p473_p9), 96  }
  0x18   : > { %s4300_s30 = smov (!%p473_p9), 88   ;;  %s4314_s1 = sld [smem:[#allocation8_spill]] (!%p473_p9) }
  0x19   : > { %s4296_s26 = smov (!%p473_p9), 48  }
  0x1b   : > { %v3579_v7 = vld [vmem:[%s4311_s4] sm:$0xff] (!%p473_p9)   ;;  %v3580_v9 = vld [vmem:[%s4311_s4 + $0x8] sm:$0xff] (!%p473_p9)  }
  0x1c   : > { %s3854_s18 = scalar_select %p524_p10, %s3825_s25, 1  ;;  %3352 = vmatpush3.bf16.msra.mxu0 %v3579_v7  ;;  %v3176_v14 = vld [vmem:[%s4312_s2] ss:$0 sm:$0xff] }
  0x1d   : > { %3353 = vmatprep.subr.bf16.mxu0 %v3705_v8  ;;  %v3177_v16 = vld [vmem:[%s4313_s3] ss:$0 sm:$0xff] }
  0x1e   : > { %s3175_s19 = sshll.u32 %s3854_s18, 3 }
  0x1f   : > { %s527_s29 = scalar_lea.vmem %s4310_s28, %s3175_s19  ;;  %s4298_s19 = smov 120  }
  0x20   : > { %v533_v0 = vld [vmem:[%s527_s29] sm:$0xff]  ;;  %3354 = vmatpush3.bf16.msra.mxu0 %v3580_v9  ;;  %s530_s29 = scalar_lea.vmem %s4314_s1, %s3854_s18  ;;  %s4297_s28 = smov 56  }
  0x21   : > { %v537_v1 = vsel %vm536_vm0, %v533_v0, 0.0  ;;  %3384 = vmatprep.subr.mxu0 %v3705_v8  ;;  %v3911_v28 = vld [vmem:[%s530_s29] ss:$0 sm:$0xff]  ;;  %s4292_s29 = smov 80   ;;  %s4291_s18 = smov 112  }
  0x22   : > { %538 = vadd.xlane.f32.xlu0 %v537_v1 }
  0xaf   : > { %v539_v2 = vpop.xlane.xlu0 %538 }
  0xb0   : > { %v541_v3 = vmul.f32 0.03125, %v539_v2 }
  0xb2   : > { %v542_v4 = vsub.f32 %v533_v0, %v541_v3 }
  0xb4   : > { %v543_v5 = vmul.f32 %v542_v4, %v542_v4 }
  0xb6   : > { %v544_v6 = vsel %vm536_vm0, %v543_v5, 0.0 }
  0xb7   : > { %545 = vadd.xlane.f32.xlu0 %v544_v6 }
 0x144   : > { %v546_v10 = vpop.xlane.xlu0 %545 }
 0x145   : > { %v547_v11 = vmul.f32 0.03125, %v546_v10 }
 0x147   : > { %v548_v12 = vadd.f32 1e-12, %v547_v11 }
 0x149   : > { %3595 = vrsqrt.f32 %v548_v12 }
 0x153   : > { %v3596_v13 = vpop.eup %3595 }
 0x154   : > { %v550_v15 = vmul.f32 %v3596_v13, %v542_v4 }
 0x156   : > { %v557_v17 = vmul.f32 %v3176_v14, %v550_v15 }
 0x158   : > { %v3882_v18 = vadd.f32 %v3177_v16, %v557_v17 }
 0x15a   : > { %v565_v19 = vpack.c.bf16 %v3882_v18, %v3882_v18 }
 0x15c   : > { %3356 = vmatmul.mubr.msk.bf16.vlgmr.msra.gmra.mrb[0].mxu0 %vm536_vm0, %v565_v19 }
 0x15d   : > { %3386 = vmatprep.mubr.msk.f32.mxu0 %vm3706_vm1, %v3705_v8  ;;  %3385 = vmatpush3.msra.mxu0 %v632_v43 }
 0x15e   : > { %3394 = vmatprep.subr.mxu0 %v3705_v8 }
 0x22f   : > { %v626_v21 = vpop.f32.mrb[0].mxu0 }
 0x230   : > { %v3892_v22 = vadd.f32 %v3178_v20, %v626_v21  ;;  %v3357_v23 = vpop.f32.mrb[1].mxu0 }
 0x231   : > { %v629_v24 = vpop.f32.mrb[2].mxu0  ;;  %v634_v23 = vld [vmem:[%s4278_s6 + $0x10] sm:$0xff] }
 0x232   : > { %731 = vrot.lane.b32.xlu0 %v3892_v22, %s4290_s20  ;;  %643 = vrot.lane.b32.xlu1 %v3892_v22, %s4299_s23  ;;  %v3358_v25 = vpop.f32.mrb[3].mxu0  ;;  %s4293_s20 = smov 72   ;;  %s4319_s23 = smov 80  }
 0x236   : > { %809 = vrot.lane.b32.xlu0 %v3892_v22, %s4300_s30  ;;  %s4320_s30 = smov 112  }
 0x2a4   : > { %v644_v26 = vpop.permute.xlu1 %643  ;;  %v732_v27 = vpop.permute.xlu0 %731 }
 0x2a5   : > { %3360 = vmatpush3.xpose.msk.msra.mxu1 %vm645_vm2, %v644_v26 }
 0x2a6   : > { %3364 = vmatprep.subr.mxu1 %v3705_v8 }
 0x2a8   : > { %3362 = vmatmul.mubr.msk.f32.vlgmr.msra.gmra.mrb[0].mxu1 %vm645_vm2, %v3892_v22  ;;  %v810_v38 = vpop.permute.xlu0 %809 }
 0x2a9   : > { %3365 = vmatpush3.msra.mxu1 %v732_v27  ;;  %3366 = vmatprep.mubr.msk.f32.mxu1 %vm3706_vm1, %v3705_v8 }
 0x2aa   : > { %3369 = vmatprep.subr.mxu1 %v3705_v8 }
 0x37b   : > { %v716_v29 = vpop.f32.mrb[0].mxu1 }
 0x37c   : > { %v717_v30 = vadd.f32 %v3911_v28, %v716_v29  ;;  %v3363_v31 = vpop.f32.mrb[1].mxu1 }
 0x37e   : > { %v720_v32 = vsel %vm645_vm2, %v717_v30, -inf }
 0x37f   : > { %721 = vmax.xlane.f32.xlu1 %v720_v32 }
 0x40c   : > { %v722_v33 = vpop.xlane.xlu1 %721 }
 0x40d   : > { %v723_v34 = vsub.f32 %v717_v30, %v722_v33 }
 0x40f   : > { %v724_v35 = vmul.f32 1.442695, %v723_v34 }
 0x411   : > { %3597 = vpow2.f32 %v724_v35 }
 0x41b   : > { %v3598_v36 = vpop.eup %3597 }
 0x41c   : > { %v726_v37 = vsel %vm645_vm2, %v3598_v36, 0.0 }
 0x41d   : > { %727 = vadd.xlane.f32.xlu0 %v726_v37 }
 0x433   : > { %807 = vrot.lane.b32.xlu0 %v3892_v22, %s4298_s19  ;;  %s4321_s19 = smov 64  }
 0x4aa   : > { %v728_v39 = vpop.xlane.xlu0 %727 }
 0x4ab   : > { %3599 = vrcp.f32 %v728_v39 }
 0x4ae   : > { %v808_v42 = vpop.permute.xlu0 %807 }
 0x4b5   : > { %v3600_v40 = vpop.eup %3599 }
 0x4b6   : > { %v730_v41 = vmul.f32 %v3600_v40, %v3598_v36 }
 0x4b8   : > { %3367 = vmatmul.mubr.msk.f32.vlgmr.msra.gmra.mrb[2].mxu1 %vm645_vm2, %v730_v41 }
 0x4b9   : > { %3370 = vmatpush3.xpose.msk.msra.mxu1 %vm645_vm2, %v810_v38  ;;  %3371 = vmatprep.mubr.msk.f32.mxu1 %vm3706_vm1, %v3705_v8 }
 0x4ba   : > { %3374 = vmatprep.subr.mxu1 %v3705_v8 }
 0x4bc   : > { %3372 = vmatmul.mubr.msk.f32.vlgmr.msra.gmra.mrb[4].mxu1 %vm645_vm2, %v808_v42 }
 0x4bd   : > { %3376 = vmatprep.mubr.msk.f32.mxu1 %vm3706_vm1, %v3705_v8 }
 0x58b   : > { %v803_v44 = vpop.f32.mrb[2].mxu1 }
 0x58c   : > { %v3368_v45 = vpop.f32.mrb[3].mxu1  ;;  %3387 = vmatmul.mubr.msk.f32.vlgmr.msra.gmra.mrb[4].mxu0 %vm645_vm2, %v803_v44 }
 0x58d   : > { %3396 = vmatprep.mubr.msk.f32.mxu0 %vm3706_vm1, %v3705_v8 }
 0x58f   : > { %v881_v46 = vpop.f32.mrb[4].mxu1 }
 0x590   : > { %v882_v47 = vadd.f32 %v3911_v28, %v881_v46  ;;  %v3373_v48 = vpop.f32.mrb[5].mxu1  ;;  %v3199_v46 = vld [vmem:[%s4279_s7] ss:$0 sm:$0xff] }
 0x592   : > { %v885_v49 = vsel %vm645_vm2, %v882_v47, -inf }
 0x593   : > { %886 = vmax.xlane.f32.xlu1 %v885_v49 }
 0x5a4   : > { %896 = vrot.lane.b32.xlu1 %v3892_v22, %s4297_s28  ;;  %s3278_s28 = sshll.u32 %s3825_s25, 7  ;;  %s3718_s25 = smov [#allocation2]  }
 0x5a8   : > { %1120 = vrot.lane.b32.xlu1 %v3892_v22, %s4292_s29  ;;  %s4294_s29 = smov 104  }
 0x5ac   : > { %1118 = vrot.lane.b32.xlu1 %v3892_v22, %s4291_s18  ;;  %s4316_s18 = smov 96  }
 0x620   : > { %v887_v50 = vpop.xlane.xlu1 %886 }
 0x621   : > { %v888_v51 = vsub.f32 %v882_v47, %v887_v50 }
 0x623   : > { %v889_v52 = vmul.f32 1.442695, %v888_v51 }
 0x624   : > { %v897_v53 = vpop.permute.xlu1 %896 }
 0x625   : > { %3601 = vpow2.f32 %v889_v52  ;;  %3375 = vmatpush3.msra.mxu1 %v897_v53 }
 0x626   : > { %3379 = vmatprep.subr.mxu1 %v3705_v8 }
 0x628   : > { %v1121_v63 = vpop.permute.xlu1 %1120 }
 0x62c   : > { %v1119_v2 = vpop.permute.xlu1 %1118 }
 0x62f   : > { %v3602_v54 = vpop.eup %3601 }
 0x630   : > { %v891_v55 = vsel %vm645_vm2, %v3602_v54, 0.0 }
 0x631   : > { %892 = vadd.xlane.f32.xlu0 %v891_v55 }
 0x647   : > { %1207 = vrot.lane.b32.xlu0 %v3892_v22, %s4296_s26  ;;  %s4317_s26 = smov 120  }
 0x64b   : > { %1359 = vrot.lane.b32.xlu0 %v3892_v22, %s4293_s20  ;;  %s4315_s20 = smov 88  }
 0x65f   : > { %v1114_v56 = vpop.f32.mrb[4].mxu0 }
 0x660   : > { %v3388_v57 = vpop.f32.mrb[5].mxu0 }
 0x661   : > { %v3581_v57 = vld [vmem:[%s4282_s10] sm:$0xff]  }
 0x6be   : > { %v893_v58 = vpop.xlane.xlu0 %892 }
 0x6bf   : > { %3603 = vrcp.f32 %v893_v58  ;;  %v3582_v58 = vld [vmem:[%s4282_s10 + $0x8] sm:$0xff]  }
 0x6c2   : > { %v1208_v59 = vpop.permute.xlu0 %1207 }
 0x6c3   : > { %3395 = vmatpush3.msra.mxu0 %v1208_v59 }
 0x6c4   : > { %3404 = vmatprep.subr.mxu0 %v3705_v8 }
 0x6c6   : > { %v1360_v16 = vpop.permute.xlu0 %1359 }
 0x6c9   : > { %v3604_v60 = vpop.eup %3603 }
 0x6ca   : > { %v895_v61 = vmul.f32 %v3604_v60, %v3602_v54 }
 0x6cc   : > { %3377 = vmatmul.mubr.msk.f32.vlgmr.msra.gmra.mrb[6].mxu1 %vm645_vm2, %v895_v61 }
 0x6cd   : > { %3380 = vmatpush3.msra.mxu1 %v633_v62  ;;  %3381 = vmatprep.mubr.msk.f32.mxu1 %vm3706_vm1, %v3705_v8  ;;  %v3200_v62 = vld [vmem:[%s4280_s8] ss:$0 sm:$0xff] }
 0x6ce   : > { %3389 = vmatprep.subr.mxu1 %v3705_v8 }
 0x79f   : > { %v968_v0 = vpop.f32.mrb[6].mxu1 }
 0x7a0   : > { %v3378_v1 = vpop.f32.mrb[7].mxu1  ;;  %3382 = vmatmul.mubr.msk.f32.vlgmr.msra.gmra.mrb[8].mxu1 %vm645_vm2, %v968_v0  ;;  %v3201_v0 = vld [vmem:[%s4281_s9] ss:$0 sm:$0xff] }
 0x7a1   : > { %3390 = vmatpush3.xpose.msk.msra.mxu1 %vm645_vm2, %v1121_v63  ;;  %3391 = vmatprep.mubr.msk.f32.mxu1 %vm3706_vm1, %v3705_v8 }
 0x7a2   : > { %3399 = vmatprep.subr.mxu1 %v3705_v8 }
 0x7a4   : > { %3392 = vmatmul.mubr.msk.f32.vlgmr.msra.gmra.mrb[10].mxu1 %vm645_vm2, %v1119_v2 }
 0x7a5   : > { %3401 = vmatprep.mubr.msk.f32.mxu1 %vm3706_vm1, %v3705_v8  ;;  %3400 = vmatpush3.msra.mxu1 %v634_v23 }
 0x7a6   : > { %3409 = vmatprep.subr.mxu1 %v3705_v8 }
 0x873   : > { %v1041_v3 = vpop.f32.mrb[8].mxu1 }
 0x874   : > { %v1115_v4 = vadd.f32 %v1114_v56, %v1041_v3  ;;  %v3383_v5 = vpop.f32.mrb[9].mxu1 }
 0x875   : > { %v3584_v5 = vld [vmem:[%s4284_s12 + $0x8] sm:$0xff]  }
 0x877   : > { %v1192_v6 = vpop.f32.mrb[10].mxu1 }
 0x878   : > { %v1193_v7 = vadd.f32 %v3911_v28, %v1192_v6  ;;  %v3393_v9 = vpop.f32.mrb[11].mxu1  ;;  %v3585_v6 = vld [vmem:[%s4284_s12 + $0x10] sm:$0xff]  }
 0x879   : > { %v3202_v9 = vld [vmem:[%s4283_s11] ss:$0 sm:$0xff] }
 0x87a   : > { %v1196_v10 = vsel %vm645_vm2, %v1193_v7, -inf }
 0x87b   : > { %1197 = vmax.xlane.f32.xlu1 %v1196_v10 }
 0x908   : > { %v1198_v11 = vpop.xlane.xlu1 %1197 }
 0x909   : > { %v1199_v12 = vsub.f32 %v1193_v7, %v1198_v11  ;;  %v3586_v7 = vld [vmem:[%s4284_s12 + $0x18] sm:$0xff]  }
 0x90b   : > { %v1200_v13 = vmul.f32 1.442695, %v1199_v12 }
 0x90d   : > { %3605 = vpow2.f32 %v1200_v13 }
 0x917   : > { %v3606_v14 = vpop.eup %3605 }
 0x918   : > { %v1202_v15 = vsel %vm645_vm2, %v3606_v14, 0.0 }
 0x919   : > { %1203 = vadd.xlane.f32.xlu0 %v1202_v15 }
 0x92f   : > { %1357 = vrot.lane.b32.xlu0 %v3892_v22, %s4294_s29  ;;  %s4295_s29 = smov 40  }
 0x9a6   : > { %v1204_v17 = vpop.xlane.xlu0 %1203 }
 0x9a7   : > { %3607 = vrcp.f32 %v1204_v17 }
 0x9aa   : > { %v1358_v21 = vpop.permute.xlu0 %1357 }
 0x9b1   : > { %v3608_v19 = vpop.eup %3607 }
 0x9b2   : > { %v1206_v20 = vmul.f32 %v3608_v19, %v3606_v14 }
 0x9b4   : > { %3397 = vmatmul.mubr.msk.f32.vlgmr.msra.gmra.mrb[6].mxu0 %vm645_vm2, %v1206_v20 }
 0x9b5   : > { %3405 = vmatpush3.xpose.msk.msra.mxu0 %vm645_vm2, %v1360_v16  ;;  %3406 = vmatprep.mubr.msk.f32.mxu0 %vm3706_vm1, %v3705_v8 }
 0x9b6   : > { %3414 = vmatprep.subr.mxu0 %v3705_v8 }
 0x9b8   : > { %3407 = vmatmul.mubr.msk.f32.vlgmr.msra.gmra.mrb[8].mxu0 %vm645_vm2, %v1358_v21 }
 0x9b9   : > { %3416 = vmatprep.mubr.msk.f32.mxu0 %vm3706_vm1, %v3705_v8 }
 0xa87   : > { %v1279_v24 = vpop.f32.mrb[6].mxu0 }
 0xa88   : > { %v3398_v25 = vpop.f32.mrb[7].mxu0  ;;  %3402 = vmatmul.mubr.msk.f32.vlgmr.msra.gmra.mrb[12].mxu1 %vm645_vm2, %v1279_v24 }
 0xa89   : > { %3411 = vmatprep.mubr.msk.f32.mxu1 %vm3706_vm1, %v3705_v8 }
 0xa8b   : > { %v1431_v26 = vpop.f32.mrb[8].mxu0 }
 0xa8c   : > { %v1432_v27 = vadd.f32 %v3911_v28, %v1431_v26  ;;  %v3408_v29 = vpop.f32.mrb[9].mxu0 }
 0xa8e   : > { %v1435_v30 = vsel %vm645_vm2, %v1432_v27, -inf }
 0xa8f   : > { %1436 = vmax.xlane.f32.xlu1 %v1435_v30 }
 0xaa0   : > { %1446 = vrot.lane.b32.xlu1 %v3892_v22, %s4295_s29  ;;  %v635_v22 = vld [vmem:[%s4278_s6 + $0x18] sm:$0xff]  ;;  %s4318_s29 = smov 56  }
 0xaa1   : > { %3415 = vmatpush3.msra.mxu0 %v635_v22 }
 0xaa2   : > { %3427 = vmatprep.subr.bf16.mxu0 %v3705_v8 }
 0xb1c   : > { %v1437_v31 = vpop.xlane.xlu1 %1436 }
 0xb1d   : > { %v1438_v32 = vsub.f32 %v1432_v27, %v1437_v31  ;;  %v3206_v27 = vld [vmem:[%s4285_s13] ss:$0 sm:$0xff] }
 0xb1f   : > { %v1439_v33 = vmul.f32 1.442695, %v1438_v32 }
 0xb20   : > { %v1447_v34 = vpop.permute.xlu1 %1446 }
 0xb21   : > { %3609 = vpow2.f32 %v1439_v33  ;;  %3410 = vmatpush3.msra.mxu1 %v1447_v34 }
 0xb22   : > { %3419 = vmatprep.subr.bf16.mxu1 %v3705_v8 }
 0xb2b   : > { %v3610_v35 = vpop.eup %3609 }
 0xb2c   : > { %v1441_v36 = vsel %vm645_vm2, %v3610_v35, 0.0 }
 0xb2d   : > { %1442 = vadd.xlane.f32.xlu0 %v1441_v36 }
 0xb5b   : > { %v1352_v37 = vpop.f32.mrb[12].mxu1 }
 0xb5c   : > { %v1356_v38 = vadd.f32 %v1352_v37, %v1115_v4  ;;  %v3403_v39 = vpop.f32.mrb[13].mxu1  ;;  %v3583_v4 = vld [vmem:[%s4284_s12] sm:$0xff]  }
 0xbba   : > { %v1443_v40 = vpop.xlane.xlu0 %1442 }
 0xbbb   : > { %3611 = vrcp.f32 %v1443_v40 }
 0xbc5   : > { %v3612_v41 = vpop.eup %3611 }
 0xbc6   : > { %v1445_v42 = vmul.f32 %v3612_v41, %v3610_v35  ;;  %v3587_v41 = vld [vmem:[%s4311_s4 + $0x10] sm:$0xff]  }
 0xbc8   : > { %3412 = vmatmul.mubr.msk.f32.vlgmr.msra.gmra.mrb[14].mxu1 %vm645_vm2, %v1445_v42  ;;  %v3588_v42 = vld [vmem:[%s4311_s4 + $0x18] sm:$0xff]   ;;  %s4229_s4 = scalar_lea.hbm %s4288_s16, %s3278_s28 }
 0xbc9   : > { %3423 = vmatprep.mubr.msk.bf16.mxu1 %vm3706_vm1, %v3705_v8  ;;  %3420 = vmatpush3.bf16.msra.mxu1 %v3581_v57 }
 0xbca   : > { %3421 = vmatprep.subr.bf16.mxu1 %v3705_v8 }
 0xbcd   : > { %3422 = vmatpush3.bf16.msra.mxu1 %v3582_v58 }
 0xbce   : > { %3439 = vmatprep.subr.bf16.mxu1 %v3705_v8 }
 0xc9b   : > { %v1518_v43 = vpop.f32.mrb[14].mxu1 }
 0xc9c   : > { %v3413_v44 = vpop.f32.mrb[15].mxu1  ;;  %3417 = vmatmul.mubr.msk.f32.vlgmr.msra.gmra.mrb[10].mxu0 %vm645_vm2, %v1518_v43 }
 0xc9d   : > { %3435 = vmatprep.mubr.msk.bf16.mxu0 %vm3706_vm1, %v3705_v8  ;;  %3428 = vmatpush3.bf16.msra.mxu0 %v3583_v4 }
 0xc9e   : > { %3429 = vmatprep.subr.bf16.mxu0 %v3705_v8 }
 0xca1   : > { %3430 = vmatpush3.bf16.msra.mxu0 %v3584_v5 }
 0xca2   : > { %3431 = vmatprep.subr.bf16.mxu0 %v3705_v8 }
 0xca5   : > { %3432 = vmatpush3.bf16.msra.mxu0 %v3585_v6 }
 0xca6   : > { %3433 = vmatprep.subr.bf16.mxu0 %v3705_v8 }
 0xca9   : > { %3434 = vmatpush3.bf16.msra.mxu0 %v3586_v7 }
 0xcaa   : > { %3452 = vmatprep.subr.mxu0 %v3705_v8 }
 0xd6f   : > { %v1591_v45 = vpop.f32.mrb[10].mxu0 }
 0xd70   : > { %v1595_v47 = vadd.f32 %v1591_v45, %v1356_v38  ;;  %v3418_v48 = vpop.f32.mrb[11].mxu0 }
 0xd71   : > { %v3213_v48 = vld [vmem:[%s4287_s15] ss:$0 sm:$0xff] }
 0xd72   : > { %v1603_v49 = vadd.f32 %v3199_v46, %v1595_v47  ;;  %v3212_v46 = vld [vmem:[%s4286_s14] ss:$0 sm:$0xff] }
 0xd74   : > { %v1604_v50 = vadd.f32 %v1603_v49, %v3882_v18 }
 0xd76   : > { %v1607_v51 = vsel %vm536_vm0, %v1604_v50, 0.0 }
 0xd77   : > { %1608 = vadd.xlane.f32.xlu1 %v1607_v51 }
 0xe04   : > { %v1609_v52 = vpop.xlane.xlu1 %1608 }
 0xe05   : > { %v1610_v53 = vmul.f32 0.03125, %v1609_v52  ;;  %v3219_v52 = vld [vmem:[%s4277_s5 + $0x1] ss:$0 sm:$0xff] }
 0xe07   : > { %v1611_v54 = vsub.f32 %v1604_v50, %v1610_v53 }
 0xe09   : > { %v1612_v55 = vmul.f32 %v1611_v54, %v1611_v54 }
 0xe0b   : > { %v1613_v56 = vsel %vm536_vm0, %v1612_v55, 0.0 }
 0xe0c   : > { %1614 = vadd.xlane.f32.xlu0 %v1613_v56 }
 0xe99   : > { %v1615_v18 = vpop.xlane.xlu0 %1614 }
 0xe9a   : > { %v1616_v59 = vmul.f32 0.03125, %v1615_v18 }
 0xe9c   : > { %v1617_v60 = vadd.f32 1e-12, %v1616_v59 }
 0xe9e   : > { %3613 = vrsqrt.f32 %v1617_v60 }
 0xea8   : > { %v3614_v61 = vpop.eup %3613 }
 0xea9   : > { %v1619_v63 = vmul.f32 %v3614_v61, %v1611_v54 }
 0xeab   : > { %v1626_v1 = vmul.f32 %v3200_v62, %v1619_v63 }
 0xead   : > { %v1633_v2 = vadd.f32 %v3201_v0, %v1626_v1 }
 0xeaf   : > { %v1634_v3 = vpack.c.bf16 %v1633_v2, %v1633_v2 }
 0xeb1   : > { %3424 = vmatmul.mubr.msk.bf16.vlgmr.msra.gmra.mrb[16].mxu1 %vm536_vm0, %v1634_v3 }
 0xeb2   : > { %3443 = vmatprep.mubr.msk.bf16.mxu1 %vm3706_vm1, %v3705_v8  ;;  %3440 = vmatpush3.bf16.msra.mxu1 %v3587_v41 }
 0xeb3   : > { %3441 = vmatprep.subr.bf16.mxu1 %v3705_v8 }
 0xeb6   : > { %3442 = vmatpush3.bf16.msra.mxu1 %v3588_v42 }
 0xeb7   : > { %3447 = vmatprep.subr.mxu1 %v3705_v8 }
 0xf84   : > { %v1695_v10 = vpop.f32.mrb[16].mxu1 }
 0xf85   : > { %v1696_v11 = vadd.f32 %v3202_v9, %v1695_v10  ;;  %v3425_v12 = vpop.f32.mrb[17].mxu1 }
 0xf86   : > { %v1698_v13 = vpop.f32.mrb[18].mxu1 }
 0xf87   : > { %v1702_v14 = vmul.f32 0.044715, %v1696_v11  ;;  %v3426_v15 = vpop.f32.mrb[19].mxu1  ;;  %v1701_v23 = vmul.f32 0.5, %v1696_v11 }
 0xf88   : > { %v3224_v15 = vld [vmem:[%s4278_s6 + $0x28] sm:$0xff] }
 0xf89   : > { %v1703_v16 = vmul.f32 %v1702_v14, %v1696_v11 }
 0xf8b   : > { %v1704_v17 = vmul.f32 %v1703_v16, %v1696_v11 }
 0xf8d   : > { %v1705_v19 = vadd.f32 %v1704_v17, %v1696_v11 }
 0xf8f   : > { %v1706_v20 = vmul.f32 0.7978846, %v1705_v19 }
 0xf91   : > { %3615 = vtanh.f32 %v1706_v20 }
 0xf9b   : > { %v3616_v21 = vpop.eup %3615 }
 0xf9c   : > { %v1708_v24 = vadd.f32 1.0, %v3616_v21 }
 0xf9e   : > { %v1709_v25 = vmul.f32 %v1708_v24, %v1701_v23 }
 0xfa0   : > { %v1710_v26 = vpack.c.bf16 %v1709_v25, %v1709_v25 }
 0xfa2   : > { %3436 = vmatmul.mubr.msk.bf16.vlgmr.msra.gmra.mrb[12].mxu0 %vm1750_vm3, %v1710_v26  ;;  %v3223_v26 = vld [vmem:[%s4278_s6 + $0x20] sm:$0xff] }
 0xfa3   : > { %3454 = vmatprep.mubr.msk.f32.mxu0 %vm3706_vm1, %v3705_v8 }
0x1075   : > { %v1788_v29 = vpop.f32.mrb[12].mxu0 }
0x1076   : > { %v1789_v30 = vadd.f32 %v3206_v27, %v1788_v29  ;;  %v3437_v31 = vpop.f32.mrb[13].mxu0 }
0x1077   : > { %v1791_v32 = vpop.f32.mrb[14].mxu0 }
0x1078   : > { %v3438_v33 = vpop.f32.mrb[15].mxu0  ;;  %v1794_v34 = vadd.f32 %v1789_v30, %v1633_v2 }
0x107a   : > { %v1797_v35 = vsel %vm536_vm0, %v1794_v34, 0.0 }
0x107b   : > { %1798 = vadd.xlane.f32.xlu0 %v1797_v35 }
0x1108   : > { %v1799_v36 = vpop.xlane.xlu0 %1798 }
0x1109   : > { %v1800_v37 = vmul.f32 0.03125, %v1799_v36 }
0x110b   : > { %v1801_v38 = vsub.f32 %v1794_v34, %v1800_v37 }
0x110d   : > { %v1802_v39 = vmul.f32 %v1801_v38, %v1801_v38 }
0x110f   : > { %v1803_v40 = vsel %vm536_vm0, %v1802_v39, 0.0 }
0x1110   : > { %1804 = vadd.xlane.f32.xlu0 %v1803_v40 }
0x119d   : > { %v1805_v22 = vpop.xlane.xlu0 %1804 }
0x119e   : > { %v1806_v43 = vmul.f32 0.03125, %v1805_v22 }
0x11a0   : > { %v1807_v44 = vadd.f32 1e-12, %v1806_v43 }
0x11a2   : > { %3617 = vrsqrt.f32 %v1807_v44 }
0x11ac   : > { %v3618_v45 = vpop.eup %3617 }
0x11ad   : > { %v1809_v47 = vmul.f32 %v3618_v45, %v1801_v38 }
0x11af   : > { %v1816_v49 = vmul.f32 %v3212_v46, %v1809_v47 }
0x11b1   : > { %v4063_v50 = vadd.f32 %v3213_v48, %v1816_v49 }
0x11b3   : > { %v1824_v51 = vpack.c.bf16 %v4063_v50, %v4063_v50 }
0x11b5   : > { %3444 = vmatmul.mubr.msk.bf16.vlgmr.msra.gmra.mrb[20].mxu1 %vm536_vm0, %v1824_v51 }
0x11b6   : > { %3449 = vmatprep.mubr.msk.f32.mxu1 %vm3706_vm1, %v3705_v8 }
0x1288   : > { %v1887_v53 = vpop.f32.mrb[20].mxu1 }
0x1289   : > { %v4073_v54 = vadd.f32 %v3219_v52, %v1887_v53  ;;  %v3445_v55 = vpop.f32.mrb[21].mxu1 }
0x128a   : > { %v1890_v56 = vpop.f32.mrb[22].mxu1  ;;  %v3225_v55 = vld [vmem:[%s4278_s6 + $0x30] sm:$0xff] }
0x128b   : > { %2064 = vrot.lane.b32.xlu1 %v4073_v54, %s4315_s20  ;;  %1899 = vrot.lane.b32.xlu0 %v4073_v54, %s4316_s18  ;;  %v3446_v57 = vpop.f32.mrb[23].mxu1  ;;  %s4325_s20 = smov 40   ;;  %s521_s18 = sand.u32 1, %s3695_s22  }
0x128f   : > { %2062 = vrot.lane.b32.xlu0 %v4073_v54, %s4317_s26  ;;  %s3174_s26 = sshll.u32 %s521_s18, 3 }
0x12fd   : > { %v1900_v58 = vpop.permute.xlu0 %1899  ;;  %v2065_v18 = vpop.permute.xlu1 %2064 }
0x12fe   : > { %3448 = vmatpush3.xpose.msk.msra.mxu1 %vm645_vm2, %v1900_v58 }
0x12ff   : > { %3457 = vmatprep.subr.mxu1 %v3705_v8 }
0x1301   : > { %3450 = vmatmul.mubr.msk.f32.vlgmr.msra.gmra.mrb[24].mxu1 %vm645_vm2, %v4073_v54  ;;  %v2063_v59 = vpop.permute.xlu0 %2062 }
0x1302   : > { %3458 = vmatpush3.xpose.msk.msra.mxu1 %vm645_vm2, %v2065_v18  ;;  %3459 = vmatprep.mubr.msk.f32.mxu1 %vm3706_vm1, %v3705_v8 }
0x1303   : > { %3467 = vmatprep.subr.mxu1 %v3705_v8 }
0x1305   : > { %3460 = vmatmul.mubr.msk.f32.vlgmr.msra.gmra.mrb[26].mxu1 %vm645_vm2, %v2063_v59 }
0x1306   : > { %3469 = vmatprep.mubr.msk.f32.mxu1 %vm3706_vm1, %v3705_v8  ;;  %3468 = vmatpush3.msra.mxu1 %v3224_v15 }
0x1307   : > { %3477 = vmatprep.subr.mxu1 %v3705_v8 }
0x13d4   : > { %v1971_v60 = vpop.f32.mrb[24].mxu1 }
0x13d5   : > { %v1972_v61 = vadd.f32 %v3911_v28, %v1971_v60  ;;  %v3451_v62 = vpop.f32.mrb[25].mxu1 }
0x13d7   : > { %v1975_v63 = vsel %vm645_vm2, %v1972_v61, -inf }
0x13d8   : > { %1976 = vmax.xlane.f32.xlu0 %v1975_v63  ;;  %v2136_v0 = vpop.f32.mrb[26].mxu1 }
0x13d9   : > { %v2137_v1 = vadd.f32 %v3911_v28, %v2136_v0  ;;  %v3461_v2 = vpop.f32.mrb[27].mxu1 }
0x13db   : > { %v2140_v3 = vsel %vm645_vm2, %v2137_v1, -inf }
0x13dc   : > { %2141 = vmax.xlane.f32.xlu1 %v2140_v3 }
0x13ed   : > { %2151 = vrot.lane.b32.xlu1 %v4073_v54, %s4318_s29  ;;  %s4322_s29 = smov 48  }
0x13f1   : > { %2375 = vrot.lane.b32.xlu1 %v4073_v54, %s4319_s23  ;;  %s4323_s23 = smov 104  }
0x13f5   : > { %2373 = vrot.lane.b32.xlu1 %v4073_v54, %s4320_s30  ;;  %s4324_s30 = smov 72  }
0x1465   : > { %v1977_v4 = vpop.xlane.xlu0 %1976 }
0x1466   : > { %v1978_v5 = vsub.f32 %v1972_v61, %v1977_v4 }
0x1468   : > { %v1979_v6 = vmul.f32 1.442695, %v1978_v5 }
0x1469   : > { %v2142_v7 = vpop.xlane.xlu1 %2141 }
0x146a   : > { %3619 = vpow2.f32 %v1979_v6  ;;  %v2143_v9 = vsub.f32 %v2137_v1, %v2142_v7 }
0x146c   : > { %v2144_v10 = vmul.f32 1.442695, %v2143_v9 }
0x146d   : > { %v2152_v23 = vpop.permute.xlu1 %2151 }
0x146e   : > { %3621 = vpow2.f32 %v2144_v10 }
0x1471   : > { %v2376_v30 = vpop.permute.xlu1 %2375 }
0x1474   : > { %v3620_v11 = vpop.eup %3619 }
0x1475   : > { %v1981_v12 = vsel %vm645_vm2, %v3620_v11, 0.0  ;;  %v2374_v33 = vpop.permute.xlu1 %2373 }
0x1476   : > { %1982 = vadd.xlane.f32.xlu0 %v1981_v12  ;;  %v3244_v12 = vld [vmem:[%s4279_s7 + $0x1] ss:$0 sm:$0xff] }
0x1478   : > { %v3622_v13 = vpop.eup %3621 }
0x1479   : > { %v2146_v14 = vsel %vm645_vm2, %v3622_v13, 0.0 }
0x147a   : > { %2147 = vadd.xlane.f32.xlu0 %v2146_v14 }
0x1490   : > { %1986 = vrot.lane.b32.xlu0 %v4073_v54, %s4321_s19 }
0x1503   : > { %v1983_v16 = vpop.xlane.xlu0 %1982 }
0x1504   : > { %3623 = vrcp.f32 %v1983_v16 }
0x1507   : > { %v2148_v17 = vpop.xlane.xlu0 %2147 }
0x1508   : > { %3625 = vrcp.f32 %v2148_v17 }
0x150b   : > { %v1987_v19 = vpop.permute.xlu0 %1986 }
0x150c   : > { %3453 = vmatpush3.msra.mxu0 %v1987_v19 }
0x150d   : > { %3462 = vmatprep.subr.mxu0 %v3705_v8 }
0x150e   : > { %v3624_v20 = vpop.eup %3623 }
0x150f   : > { %v1985_v21 = vmul.f32 %v3624_v20, %v3620_v11 }
0x1511   : > { %3455 = vmatmul.mubr.msk.f32.vlgmr.msra.gmra.mrb[16].mxu0 %vm645_vm2, %v1985_v21 }
0x1512   : > { %v3626_v24 = vpop.eup %3625  ;;  %3463 = vmatpush3.msra.mxu0 %v2152_v23  ;;  %3464 = vmatprep.mubr.msk.f32.mxu0 %vm3706_vm1, %v3705_v8 }
0x1513   : > { %v2150_v25 = vmul.f32 %v3626_v24, %v3622_v13  ;;  %3472 = vmatprep.subr.mxu0 %v3705_v8 }
0x1515   : > { %3465 = vmatmul.mubr.msk.f32.vlgmr.msra.gmra.mrb[18].mxu0 %vm645_vm2, %v2150_v25  ;;  %v3589_v25 = vld [vmem:[%s4282_s10 + $0x10] sm:$0xff]  }
0x1516   : > { %3474 = vmatprep.mubr.msk.f32.mxu0 %vm3706_vm1, %v3705_v8  ;;  %3473 = vmatpush3.msra.mxu0 %v3223_v26  ;;  %v3590_v26 = vld [vmem:[%s4282_s10 + $0x18] sm:$0xff]  }
0x1517   : > { %3482 = vmatprep.subr.mxu0 %v3705_v8 }
0x15e4   : > { %v2058_v27 = vpop.f32.mrb[16].mxu0 }
0x15e5   : > { %v3456_v29 = vpop.f32.mrb[17].mxu0  ;;  %3475 = vmatmul.mubr.msk.f32.vlgmr.msra.gmra.mrb[20].mxu0 %vm645_vm2, %v2058_v27 }
0x15e6   : > { %3484 = vmatprep.mubr.msk.f32.mxu0 %vm3706_vm1, %v3705_v8 }
0x15e8   : > { %v2223_v31 = vpop.f32.mrb[18].mxu0 }
0x15e9   : > { %v3466_v32 = vpop.f32.mrb[19].mxu0  ;;  %3470 = vmatmul.mubr.msk.f32.vlgmr.msra.gmra.mrb[28].mxu1 %vm645_vm2, %v2223_v31  ;;  %v3247_v31 = vld [vmem:[%s4280_s8 + $0x1] ss:$0 sm:$0xff] }
0x15ea   : > { %3478 = vmatpush3.xpose.msk.msra.mxu1 %vm645_vm2, %v2376_v30  ;;  %3479 = vmatprep.mubr.msk.f32.mxu1 %vm3706_vm1, %v3705_v8 }
0x15eb   : > { %3487 = vmatprep.subr.mxu1 %v3705_v8 }
0x15ed   : > { %3480 = vmatmul.mubr.msk.f32.vlgmr.msra.gmra.mrb[30].mxu1 %vm645_vm2, %v2374_v33  ;;  %v3248_v33 = vld [vmem:[%s4281_s9 + $0x1] ss:$0 sm:$0xff] }
0x15ee   : > { %3489 = vmatprep.mubr.msk.f32.mxu1 %vm3706_vm1, %v3705_v8  ;;  %3488 = vmatpush3.msra.mxu1 %v3225_v55 }
0x15ef   : > { %3497 = vmatprep.subr.mxu1 %v3705_v8 }
0x16b8   : > { %v2369_v34 = vpop.f32.mrb[20].mxu0 }
0x16b9   : > { %v3476_v35 = vpop.f32.mrb[21].mxu0 }
0x16bc   : > { %v2296_v36 = vpop.f32.mrb[28].mxu1 }
0x16bd   : > { %v2370_v37 = vadd.f32 %v2369_v34, %v2296_v36  ;;  %v3471_v38 = vpop.f32.mrb[29].mxu1 }
0x16be   : > { %v3592_v38 = vld [vmem:[%s4284_s12 + $0x28] sm:$0xff]  }
0x16c0   : > { %v2447_v39 = vpop.f32.mrb[30].mxu1 }
0x16c1   : > { %v2448_v40 = vadd.f32 %v3911_v28, %v2447_v39  ;;  %v3481_v41 = vpop.f32.mrb[31].mxu1  ;;  %v3593_v39 = vld [vmem:[%s4284_s12 + $0x30] sm:$0xff]  }
0x16c2   : > { %v3254_v41 = vld [vmem:[%s4283_s11 + $0x1] ss:$0 sm:$0xff] }
0x16c3   : > { %v2451_v42 = vsel %vm645_vm2, %v2448_v40, -inf }
0x16c4   : > { %2452 = vmax.xlane.f32.xlu0 %v2451_v42 }
0x16da   : > { %2462 = vrot.lane.b32.xlu0 %v4073_v54, %s4322_s29  ;;  %s3089_s29 = scalar_lea.sflag [#allocation3], %s521_s18 }
0x16de   : > { %2612 = vrot.lane.b32.xlu0 %v4073_v54, %s4323_s23 }
0x1751   : > { %v2453_v22 = vpop.xlane.xlu0 %2452 }
0x1752   : > { %v2454_v43 = vsub.f32 %v2448_v40, %v2453_v22  ;;  %v3594_v40 = vld [vmem:[%s4284_s12 + $0x38] sm:$0xff]  }
0x1754   : > { %v2455_v44 = vmul.f32 1.442695, %v2454_v43 }
0x1755   : > { %v2463_v45 = vpop.permute.xlu0 %2462 }
0x1756   : > { %3627 = vpow2.f32 %v2455_v44  ;;  %3483 = vmatpush3.msra.mxu0 %v2463_v45 }
0x1757   : > { %3492 = vmatprep.subr.mxu0 %v3705_v8 }
0x1759   : > { %v2613_v53 = vpop.permute.xlu0 %2612 }
0x1760   : > { %v3628_v46 = vpop.eup %3627 }
0x1761   : > { %v2457_v47 = vsel %vm645_vm2, %v3628_v46, 0.0 }
0x1762   : > { %2458 = vadd.xlane.f32.xlu1 %v2457_v47 }
0x1773   : > { %2614 = vrot.lane.b32.xlu1 %v4073_v54, %s4324_s30 }
0x17ef   : > { %v2459_v48 = vpop.xlane.xlu1 %2458 }
0x17f0   : > { %3629 = vrcp.f32 %v2459_v48 }
0x17f3   : > { %v2615_v52 = vpop.permute.xlu1 %2614 }
0x17fa   : > { %v3630_v49 = vpop.eup %3629 }
0x17fb   : > { %v2461_v51 = vmul.f32 %v3630_v49, %v3628_v46 }
0x17fd   : > { %3485 = vmatmul.mubr.msk.f32.vlgmr.msra.gmra.mrb[22].mxu0 %vm645_vm2, %v2461_v51 }
0x17fe   : > { %3493 = vmatpush3.xpose.msk.msra.mxu0 %vm645_vm2, %v2615_v52  ;;  %3494 = vmatprep.mubr.msk.f32.mxu0 %vm3706_vm1, %v3705_v8 }
0x17ff   : > { %3502 = vmatprep.subr.mxu0 %v3705_v8 }
0x1801   : > { %3495 = vmatmul.mubr.msk.f32.vlgmr.msra.gmra.mrb[24].mxu0 %vm645_vm2, %v2613_v53 }
0x1802   : > { %3504 = vmatprep.mubr.msk.f32.mxu0 %vm3706_vm1, %v3705_v8 }
0x18d0   : > { %v2534_v56 = vpop.f32.mrb[22].mxu0 }
0x18d1   : > { %v3486_v57 = vpop.f32.mrb[23].mxu0  ;;  %3490 = vmatmul.mubr.msk.f32.vlgmr.msra.gmra.mrb[32].mxu1 %vm645_vm2, %v2534_v56 }
0x18d2   : > { %3499 = vmatprep.mubr.msk.f32.mxu1 %vm3706_vm1, %v3705_v8  ;;  %v3267_v57 = vld [vmem:[%s4285_s13 + $0x1] ss:$0 sm:$0xff] }
0x18d4   : > { %v2686_v58 = vpop.f32.mrb[24].mxu0 }
0x18d5   : > { %v2687_v18 = vadd.f32 %v3911_v28, %v2686_v58  ;;  %v3496_v59 = vpop.f32.mrb[25].mxu0 }
0x18d7   : > { %v2690_v60 = vsel %vm645_vm2, %v2687_v18, -inf }
0x18d8   : > { %2691 = vmax.xlane.f32.xlu1 %v2690_v60 }
0x1965   : > { %v2692_v61 = vpop.xlane.xlu1 %2691 }
0x1966   : > { %v2693_v62 = vsub.f32 %v2687_v18, %v2692_v61 }
0x1968   : > { %v2694_v63 = vmul.f32 1.442695, %v2693_v62 }
0x196a   : > { %3631 = vpow2.f32 %v2694_v63 }
0x1974   : > { %v3632_v0 = vpop.eup %3631 }
0x1975   : > { %v2696_v1 = vsel %vm645_vm2, %v3632_v0, 0.0 }
0x1976   : > { %2697 = vadd.xlane.f32.xlu0 %v2696_v1 }
0x198c   : > { %2701 = vrot.lane.b32.xlu0 %v4073_v54, %s4325_s20  ;;  %v3226_v54 = vld [vmem:[%s4278_s6 + $0x38] sm:$0xff]  ;;  %s523_s20 = scalar_lea.vmem [#allocation2], %s3174_s26  ;;  %s3645_s26 = sshll.u32 %s3718_s25, 4  ;;  %s3646_s26 = int_to_ptr.vmem [resolvable:$false] %s3645_s26 }
0x198d   : > { %3503 = vmatpush3.msra.mxu0 %v3226_v54  ;;  %v3275_v54 = vld [vmem:[%s4286_s14 + $0x1] ss:$0 sm:$0xff]  ;;  %s3102_s1 = sshll.u32 %s523_s20, 4  ;;  %s3647_s30 = scalar_lea.vmem %s3646_s26, 256  ;;  %s4231_s1 = int_to_ptr.vmem [resolvable:$true] %s3102_s1 }
0x198e   : > { %3515 = vmatprep.subr.bf16.mxu0 %v3705_v8  ;;  %s3641_s23 = scalar_lea.vmem %s4231_s1, 128  ;;  %p3648_p0 = scmp.lt.s32.totalorder %s4231_s1, %s3646_s26 }
0x198f   : > { %p3642_p11 = scmp.ne.s32.totalorder %s4231_s1, %s3641_s23  ;;  %p3649_p1 = scmp.lt.s32.totalorder %s3647_s30, %s3641_s23 }
0x1991   : > { %p3643_p12 = pnand %p3642_p11, %p3842_p5  ;;  %p3650_p2 = por %p3649_p1, %p3648_p0 }
0x1993   : > { %p3644_p13 = pneg %p3643_p12 }
0x1995   : > { %p3651_p3 = pnand %p3650_p2, %p3644_p13 }
0x19a4   : > { %v2607_v2 = vpop.f32.mrb[32].mxu1 }
0x19a5   : > { %v2611_v3 = vadd.f32 %v2607_v2, %v2370_v37  ;;  %v3491_v4 = vpop.f32.mrb[33].mxu1  ;;  %v3591_v37 = vld [vmem:[%s4284_s12 + $0x20] sm:$0xff]  }
0x1a03   : > { %v2698_v5 = vpop.xlane.xlu0 %2697 }
0x1a04   : > { %3633 = vrcp.f32 %v2698_v5 }
0x1a07   : > { %v2702_v28 = vpop.permute.xlu0 %2701 }
0x1a08   : > { %3498 = vmatpush3.msra.mxu1 %v2702_v28 }
0x1a09   : > { %3507 = vmatprep.subr.bf16.mxu1 %v3705_v8 }
0x1a0e   : > { %v3634_v6 = vpop.eup %3633 }
0x1a0f   : > { %v2700_v7 = vmul.f32 %v3634_v6, %v3632_v0 }
0x1a11   : > { %3500 = vmatmul.mubr.msk.f32.vlgmr.msra.gmra.mrb[34].mxu1 %vm645_vm2, %v2700_v7 }
0x1a12   : > { %3511 = vmatprep.mubr.msk.bf16.mxu1 %vm3706_vm1, %v3705_v8  ;;  %3508 = vmatpush3.bf16.msra.mxu1 %v3589_v25 }
0x1a13   : > { %3509 = vmatprep.subr.bf16.mxu1 %v3705_v8 }
0x1a16   : > { %3510 = vmatpush3.bf16.msra.mxu1 %v3590_v26 }
0x1ae4   : > { %v2773_v9 = vpop.f32.mrb[34].mxu1 }
0x1ae5   : > { %v3501_v10 = vpop.f32.mrb[35].mxu1  ;;  %3505 = vmatmul.mubr.msk.f32.vlgmr.msra.gmra.mrb[26].mxu0 %vm645_vm2, %v2773_v9 }
0x1ae6   : > { %3523 = vmatprep.mubr.msk.bf16.mxu0 %vm3706_vm1, %v3705_v8  ;;  %3516 = vmatpush3.bf16.msra.mxu0 %v3591_v37  ;;  %v3276_v10 = vld [vmem:[%s4287_s15 + $0x1] ss:$0 sm:$0xff] }
0x1ae7   : > { %3517 = vmatprep.subr.bf16.mxu0 %v3705_v8 }
0x1aea   : > { %3518 = vmatpush3.bf16.msra.mxu0 %v3592_v38 }
0x1aeb   : > { %3519 = vmatprep.subr.bf16.mxu0 %v3705_v8 }
0x1aee   : > { %3520 = vmatpush3.bf16.msra.mxu0 %v3593_v39 }
0x1aef   : > { %3521 = vmatprep.subr.bf16.mxu0 %v3705_v8 }
0x1af2   : > { %3522 = vmatpush3.bf16.msra.mxu0 %v3594_v40 }
0x1bb8   : > { %v2846_v11 = vpop.f32.mrb[26].mxu0 }
0x1bb9   : > { %v2850_v13 = vadd.f32 %v2846_v11, %v2611_v3  ;;  %v3506_v14 = vpop.f32.mrb[27].mxu0 }
0x1bbb   : > { %v2859_v15 = vadd.f32 %v3244_v12, %v2850_v13 }
0x1bbd   : > { %v2860_v16 = vadd.f32 %v2859_v15, %v4063_v50 }
0x1bbf   : > { %v2865_v17 = vsel %vm536_vm0, %v2860_v16, 0.0 }
0x1bc0   : > { %2866 = vadd.xlane.f32.xlu1 %v2865_v17 }
0x1c4d   : > { %v2867_v19 = vpop.xlane.xlu1 %2866 }
0x1c4e   : > { %v2868_v20 = vmul.f32 0.03125, %v2867_v19 }
0x1c50   : > { %v2869_v21 = vsub.f32 %v2860_v16, %v2868_v20 }
0x1c52   : > { %v2870_v23 = vmul.f32 %v2869_v21, %v2869_v21 }
0x1c54   : > { %v2871_v24 = vsel %vm536_vm0, %v2870_v23, 0.0 }
0x1c55   : > { %2872 = vadd.xlane.f32.xlu1 %v2871_v24 }
0x1ce2   : > { %v2873_v50 = vpop.xlane.xlu1 %2872 }
0x1ce3   : > { %v2874_v27 = vmul.f32 0.03125, %v2873_v50 }
0x1ce5   : > { %v2875_v29 = vadd.f32 1e-12, %v2874_v27 }
0x1ce7   : > { %3635 = vrsqrt.f32 %v2875_v29 }
0x1cf1   : > { %v3636_v30 = vpop.eup %3635 }
0x1cf2   : > { %v2877_v32 = vmul.f32 %v3636_v30, %v2869_v21 }
0x1cf4   : > { %v2884_v34 = vmul.f32 %v3247_v31, %v2877_v32 }
0x1cf6   : > { %v2891_v35 = vadd.f32 %v3248_v33, %v2884_v34 }
0x1cf8   : > { %v2892_v36 = vpack.c.bf16 %v2891_v35, %v2891_v35 }
0x1cfa   : > { %3512 = vmatmul.mubr.msk.bf16.vlgmr.msra.gmra.mrb[36].mxu1 %vm536_vm0, %v2892_v36 }
0x1dcd   : > { %v2955_v42 = vpop.f32.mrb[36].mxu1 }
0x1dce   : > { %v2956_v22 = vadd.f32 %v3254_v41, %v2955_v42  ;;  %v3513_v43 = vpop.f32.mrb[37].mxu1 }
0x1dcf   : > { %v2958_v44 = vpop.f32.mrb[38].mxu1 }
0x1dd0   : > { %v2962_v45 = vmul.f32 0.044715, %v2956_v22  ;;  %v3514_v46 = vpop.f32.mrb[39].mxu1  ;;  %v2961_v53 = vmul.f32 0.5, %v2956_v22 }
0x1dd2   : > { %v2963_v47 = vmul.f32 %v2962_v45, %v2956_v22 }
0x1dd4   : > { %v2964_v48 = vmul.f32 %v2963_v47, %v2956_v22 }
0x1dd6   : > { %v2965_v49 = vadd.f32 %v2964_v48, %v2956_v22 }
0x1dd8   : > { %v2966_v51 = vmul.f32 0.7978846, %v2965_v49 }
0x1dda   : > { %3637 = vtanh.f32 %v2966_v51 }
0x1de4   : > { %v3638_v52 = vpop.eup %3637 }
0x1de5   : > { %v2968_v55 = vadd.f32 1.0, %v3638_v52 }
0x1de7   : > { %v2969_v8 = vmul.f32 %v2968_v55, %v2961_v53 }
0x1de9   : > { %v2970_v56 = vpack.c.bf16 %v2969_v8, %v2969_v8 }
0x1deb   : > { %3524 = vmatmul.mubr.msk.bf16.vlgmr.msra.gmra.mrb[28].mxu0 %vm1750_vm3, %v2970_v56 }
0x1ebe   : > { %v3049_v58 = vpop.f32.mrb[28].mxu0 }
0x1ebf   : > { %v3050_v18 = vadd.f32 %v3267_v57, %v3049_v58  ;;  %v3525_v59 = vpop.f32.mrb[29].mxu0 }
0x1ec0   : > { %v3052_v60 = vpop.f32.mrb[30].mxu0 }
0x1ec1   : > { %v3526_v61 = vpop.f32.mrb[31].mxu0  ;;  %v3055_v62 = vadd.f32 %v3050_v18, %v2891_v35 }
0x1ec3   : > { %v3060_v63 = vsel %vm536_vm0, %v3055_v62, 0.0 }
0x1ec4   : > { %3061 = vadd.xlane.f32.xlu1 %v3060_v63 }
0x1f51   : > { %v3062_v0 = vpop.xlane.xlu1 %3061 }
0x1f52   : > { %v3063_v1 = vmul.f32 0.03125, %v3062_v0 }
0x1f54   : > { %v3064_v2 = vsub.f32 %v3055_v62, %v3063_v1 }
0x1f56   : > { %v3065_v3 = vmul.f32 %v3064_v2, %v3064_v2 }
0x1f58   : > { %v3066_v4 = vsel %vm536_vm0, %v3065_v3, 0.0 }
0x1f59   : > { %3067 = vadd.xlane.f32.xlu1 %v3066_v4 }
0x1fe6   : > { %v3068_v5 = vpop.xlane.xlu1 %3067 }
0x1fe7   : > { %v3069_v28 = vmul.f32 0.03125, %v3068_v5 }
0x1fe9   : > { %v3070_v6 = vadd.f32 1e-12, %v3069_v28 }
0x1feb   : > { %3639 = vrsqrt.f32 %v3070_v6 }
0x1ff5   : > { %v3640_v7 = vpop.eup %3639 }
0x1ff6   : > { %v3072_v9 = vmul.f32 %v3640_v7, %v3064_v2 }
0x1ff8   : > { %v3079_v11 = vmul.f32 %v3275_v54, %v3072_v9 }
0x1ffa   : > { %v3086_v12 = vadd.f32 %v3276_v10, %v3079_v11 }
0x1ffc   : > { %3087 = vst.msk [vmem:[%s523_s20] sm:$0xff] %vm536_vm0, %v3086_v12 }
0x1ffd   : > { %3654 = shalt.err (!%p3651_p3)
}
0x1ffe   : > { %s3655_s2 = scalar_lea.hbm %s4229_s4, 128  ;;  %s3659_s19 = scalar_lea.hbm %s4288_s16, 256 }
0x1fff   : > { %p3656_p4 = scmp.ne.s32.totalorder %s4229_s4, %s3655_s2  ;;  %p3660_p9 = scmp.lt.u32.totalorder %s4229_s4, %s4288_s16 }
0x2000   : > { %p3661_p10 = scmp.lt.u32.totalorder %s3659_s19, %s3655_s2  ;;  %p3663_p12 = scmp.lt.u32.totalorder %s3655_s2, %s4229_s4 }
0x2001   : > { %p3657_p7 = pnand %p3656_p4, %p3842_p5 }
0x2002   : > { %p3662_p11 = por %p3661_p10, %p3660_p9 }
0x2003   : > { %p3658_p8 = pneg %p3657_p7 }
0x2004   : > { %p3664_p13 = por %p3663_p12, %p3662_p11 }
0x2006   : > { %p3665_p0 = pnand %p3664_p13, %p3658_p8 }
0x2008   : > { %3668 = shalt.err (!%p3665_p0)
}
0x2009   : > { %3527 = dma.vmem_to_hbm [thread:$0]  (%p3842_p5), %s4231_s1, 128, %s4229_s4, %s3089_s29  }
0x200a PF: > { %p3533_p1 = scmp.ge.s32.totalorder %s3703_s24, 2  ;;  %s3114_s23 = sand.u32 1, %s3691_s21  }
0x200b   : > { %s3115_s25 = scalar_lea.sflag [#allocation3], %s3114_s23 }
0x200c   : > { %p3530_p2 = pnand %p3533_p1, %p3846_p6 }
0x200e   : > { %3686 = dma.done.wait (!%p3530_p2), %s3115_s25, 128  }
0x200f   : > { %3688 = vsyncadd (!%p3530_p2), %s3115_s25, 4294967168  ;;  %s4326_s26 = sld [smem:[#allocation5_spill]]  ;;  %s4327_s23 = sld [smem:[#allocation6_spill]] }
0x2010   : > { %p26_p3 = scmp.ge.s32.totalorder %s3829_s27, 4   ;;  %s4328_s21 = smov %s3695_s22 }
0x2011   : > { %s4330_s24 = smov %s3829_s27 }
0x2012   :  { %28 = sbr.rel (!%p26_p3) target bundleno = 9 (0x9), region = 134 }
0x2015   : > { %s4329_s22 = smov %s4326_s26 }
0x2019   :  { %3120 = vsyncpa [#allocation3], 1 }
0x201a   :  { %3122 = vsyncpa [#allocation3 + $0x1], 1 }

</bundles_post_ra>
